<compile_context>
chip_gen: v5e
topology: v5e:2x2
jax: 0.10.0
libtpu: 0.0.40
codegen_flags: <defaults>
</compile_context>

<pallas_src>
import jax
import jax.numpy as jnp
import numpy as np
from jax.experimental import pallas as pl
from jax.experimental.pallas import tpu as pltpu

HIDDEN = 100           # true hidden width of the MLP
LANE = 128             # hidden width padded to one full vreg lane/sublane group
MAX_SINGLE_BLOCK = 4096  # up to this many rows: one grid step (no per-step overhead)
TM_LARGE = 2048        # lane-dim batch tile for large batches


def mlp_kernel(x_ref, w2t_ref, p_ref, o_ref):
    # x_ref : (1, TM) f32      batch in lanes
    # w2t_ref: (LANE, LANE) bf16   pre-transposed second-layer weight
    # p_ref : (LANE, 8) f32    packed small params (cols: w1, b1, b2, w3, b3)
    # o_ref : (1, TM) f32      lane-dense output row
    x = x_ref[...]                                   # (1, TM)
    w1c = p_ref[:, 0:1]                              # (LANE, 1)
    b1c = p_ref[:, 1:2]
    b2c = p_ref[:, 2:3]
    w3c = p_ref[:, 3:4]
    b3 = p_ref[0:1, 4:5]                             # (1, 1)

    # Layer 1 (in_features = 1): outer-product broadcast on the VPU, no K=1 matmul.
    h1 = jnp.tanh(w1c * x + b1c)                     # (LANE, TM) f32

    # Layer 2: the only real matmul (MXU). bf16 operands, f32 accumulate.
    s2 = jnp.dot(w2t_ref[...], h1.astype(jnp.bfloat16),
                 preferred_element_type=jnp.float32)
    h2 = jnp.tanh(s2 + b2c)                          # (LANE, TM) f32

    # Layer 3 (out_features = 1): sublane (hidden-axis) reduction -> one lane-dense row.
    o_ref[...] = jnp.sum(h2 * w3c, axis=0, keepdims=True) + b3


def prepare_params(params):
    """Pack / pad static parameters ONCE (outside the jitted forward).

    Zero padding is inert: padded w1/b1 rows give tanh(0)=0 activations which
    meet zero-padded w2/w3 rows/columns."""
    w1, b1, w2, b2, w3, b3 = params
    small = jnp.zeros((LANE, 8), jnp.float32)
    small = small.at[:HIDDEN, 0].set(w1.reshape(-1).astype(jnp.float32))   # w1 col
    small = small.at[:HIDDEN, 1].set(b1.astype(jnp.float32))               # b1 col
    small = small.at[:HIDDEN, 2].set(b2.astype(jnp.float32))               # b2 col
    small = small.at[:HIDDEN, 3].set(w3.reshape(-1).astype(jnp.float32))   # w3 col
    small = small.at[0, 4].set(b3.reshape(()).astype(jnp.float32))         # b3 scalar

    # w2 stored (in, out); kernel needs h2_T = w2^T @ h1_T, so pre-transpose.
    w2t = jnp.zeros((LANE, LANE), jnp.float32)
    w2t = w2t.at[:HIDDEN, :HIDDEN].set(w2.T.astype(jnp.float32))
    w2t = w2t.astype(jnp.bfloat16)                                         # (128, 128)
    return (w2t, small)


def _round_up(a, m):
    return ((a + m - 1) // m) * m


@jax.jit
def simple_mlp_forward(x, packed_params):
    """x: (N, 1) float32 -> (N, 1) float32, matching SimpleMLP.forward."""
    w2t, small = packed_params
    n = x.shape[0]
    # (N,1) -> (1,N) is a pure reshape (no transpose) because one dim is 1.
    x_row = x.astype(jnp.float32).reshape(1, n)

    if n <= MAX_SINGLE_BLOCK:
        tm = _round_up(n, LANE)   # one 128-aligned block covering the whole batch
    else:
        tm = TM_LARGE
    grid = (pl.cdiv(n, tm),)

    out_row = pl.pallas_call(
        mlp_kernel,
        out_shape=jax.ShapeDtypeStruct((1, n), jnp.float32),
        grid_spec=pltpu.PrefetchScalarGridSpec(
            num_scalar_prefetch=0,
            grid=grid,
            in_specs=[
                pl.BlockSpec((1, tm), lambda i: (0, i)),           # x row tile
                pl.BlockSpec((LANE, LANE), lambda i: (0, 0)),      # w2^T (resident)
                pl.BlockSpec((LANE, 8), lambda i: (0, 0)),         # packed small params
            ],
            out_specs=pl.BlockSpec((1, tm), lambda i: (0, i)),     # lane-dense output
        ),
        compiler_params=pltpu.CompilerParams(
            # "parallel" vs "arbitrary" has near-zero measured effect on v5e/v6e;
            # use pltpu.CORE_PARALLEL on v7x only for large-N multi-block grids.
            dimension_semantics=("arbitrary",),
        ),
    )(x_row, w2t, small)

    return out_row.reshape(n, 1)


def init_params(key):
    """Deterministic init mimicking torch.nn.Linear default U(-1/sqrt(in), 1/sqrt(in)).

    Weights are stored transposed: (in_features, out_features)."""
    ks = jax.random.split(key, 6)

    def linear(kw, kb, fan_in, fan_out):
        bound = 1.0 / jnp.sqrt(float(fan_in))
        w = jax.random.uniform(kw, (fan_in, fan_out), jnp.float32, -bound, bound)
        b = jax.random.uniform(kb, (fan_out,), jnp.float32, -bound, bound)
        return w, b

    w1, b1 = linear(ks[0], ks[1], 1, 100)
    w2, b2 = linear(ks[2], ks[3], 100, 100)
    w3, b3 = linear(ks[4], ks[5], 100, 1)
    return (w1, b1, w2, b2, w3, b3)


def reference_forward_f64(x, params):
    """Ground-truth forward in float64 numpy."""
    w1, b1, w2, b2, w3, b3 = [np.asarray(p, np.float64) for p in params]
    xx = np.asarray(x, np.float64)
    h1 = np.tanh(xx @ w1 + b1)
    h2 = np.tanh(h1 @ w2 + b2)
    return h2 @ w3 + b3


if __name__ == "__main__":
    key = jax.random.PRNGKey(0)
    params = init_params(key)
    packed_params = prepare_params(params)   # done once, static across calls

    # Input like the original script: np.linspace(-2*pi, 2*pi, 1000) as (N, 1).
    n = 1000
    x = jnp.linspace(-2 * jnp.pi, 2 * jnp.pi, n, dtype=jnp.float32).reshape(n, 1)

    y = simple_mlp_forward(x, packed_params)
    y = jax.block_until_ready(y)

    y_ref = reference_forward_f64(x, params)
    assert y.shape == (n, 1)
    # bf16 MXU operands (f32 accumulate) vs float64 ground truth: worst-case
    # rounding budget is a few e-3 over the 100-wide hidden sums, so 1e-2
    # still catches any wiring/layout error while tolerating bf16 rounding.
    err = float(np.max(np.abs(np.asarray(y, np.float64) - y_ref)))
    assert err < 1e-2, err

    print("KERNEL_OK")
</pallas_src>

<mosaic_0001>
module attributes {stable_mosaic.version = 11 : i64} {
  func.func @mlp_kernel(%arg0: i32, %arg1: memref<1x1024xf32, #tpu.memory_space<vmem>>, %arg2: memref<128x128xbf16, #tpu.memory_space<vmem>>, %arg3: memref<128x8xf32, #tpu.memory_space<vmem>>, %arg4: memref<1x1024xf32, #tpu.memory_space<vmem>>) attributes {dimension_semantics = [#tpu.dimension_semantics<arbitrary>], iteration_bounds = array<i64: 1>, scalar_prefetch = 0 : i64, scratch_operands = 0 : i64, tpu.core_type = #tpu.core_type<tc>, window_params = [{transform_indices = @transform_0, window_bounds = array<i64: 1, 1024>}, {pipeline_mode = #tpu.pipeline_mode<synchronous>, transform_indices = @transform_1, window_bounds = array<i64: 128, 128>}, {pipeline_mode = #tpu.pipeline_mode<synchronous>, transform_indices = @transform_2, window_bounds = array<i64: 128, 8>}, {transform_indices = @transform_3, window_bounds = array<i64: 1, 1024>}]} {
    %c0 = arith.constant 0 : index
    %c0_0 = arith.constant 0 : index
    %0 = vector.load %arg1[%c0, %c0_0] : memref<1x1024xf32, #tpu.memory_space<vmem>>, vector<1x1024xf32>
    %c0_1 = arith.constant 0 : index
    %c0_2 = arith.constant 0 : index
    %1 = vector.load %arg3[%c0_1, %c0_2] : memref<128x8xf32, #tpu.memory_space<vmem>>, vector<128x1xf32>
    %c0_3 = arith.constant 0 : index
    %c1 = arith.constant 1 : index
    %2 = vector.load %arg3[%c0_3, %c1] : memref<128x8xf32, #tpu.memory_space<vmem>>, vector<128x1xf32>
    %c0_4 = arith.constant 0 : index
    %c2 = arith.constant 2 : index
    %3 = vector.load %arg3[%c0_4, %c2] : memref<128x8xf32, #tpu.memory_space<vmem>>, vector<128x1xf32>
    %c0_5 = arith.constant 0 : index
    %c3 = arith.constant 3 : index
    %4 = vector.load %arg3[%c0_5, %c3] : memref<128x8xf32, #tpu.memory_space<vmem>>, vector<128x1xf32>
    %c0_6 = arith.constant 0 : index
    %c4 = arith.constant 4 : index
    %5 = vector.load %arg3[%c0_6, %c4] : memref<128x8xf32, #tpu.memory_space<vmem>>, vector<1x1xf32>
    %6 = vector.broadcast %1 : vector<128x1xf32> to vector<128x1024xf32>
    %7 = vector.broadcast %0 : vector<1x1024xf32> to vector<128x1024xf32>
    %8 = arith.mulf %6, %7 : vector<128x1024xf32>
    %9 = vector.broadcast %2 : vector<128x1xf32> to vector<128x1024xf32>
    %10 = arith.addf %8, %9 : vector<128x1024xf32>
    %11 = math.tanh %10 : vector<128x1024xf32>
    %c0_7 = arith.constant 0 : index
    %c0_8 = arith.constant 0 : index
    %12 = vector.load %arg2[%c0_7, %c0_8] : memref<128x128xbf16, #tpu.memory_space<vmem>>, vector<128x128xbf16>
    %13 = arith.truncf %11 : vector<128x1024xf32> to vector<128x1024xbf16>
    %cst = arith.constant dense<0.000000e+00> : vector<128x1024xf32>
    %14 = tpu.matmul %12, %13, %cst {dimension_numbers = #tpu.dot_dimension_numbers<[1], [0], [0], [1], [0, 0, 1, 1], [], []>} : vector<128x128xbf16>, vector<128x1024xbf16>, vector<128x1024xf32> -> vector<128x1024xf32>
    %15 = vector.broadcast %3 : vector<128x1xf32> to vector<128x1024xf32>
    %16 = arith.addf %14, %15 : vector<128x1024xf32>
    %17 = math.tanh %16 : vector<128x1024xf32>
    %18 = vector.broadcast %4 : vector<128x1xf32> to vector<128x1024xf32>
    %19 = arith.mulf %17, %18 : vector<128x1024xf32>
    %cst_9 = arith.constant dense<0.000000e+00> : vector<1024xf32>
    %20 = vector.multi_reduction <add>, %19, %cst_9 [0] : vector<128x1024xf32> to vector<1024xf32>
    %21 = vector.shape_cast %20 : vector<1024xf32> to vector<1x1024xf32>
    %22 = vector.broadcast %5 : vector<1x1xf32> to vector<1x1024xf32>
    %23 = arith.addf %21, %22 : vector<1x1024xf32>
    %c0_10 = arith.constant 0 : index
    %c0_11 = arith.constant 0 : index
    %24 = vector.load %arg4[%c0_10, %c0_11] : memref<1x1024xf32, #tpu.memory_space<vmem>>, vector<1x1024xf32>
    tpu.vector_store %arg4[%c0_10, %c0_11], %23 {strides = array<i32>} : memref<1x1024xf32, #tpu.memory_space<vmem>>, vector<1x1024xf32>,
    return
  }
  func.func @transform_0(%arg0: i32) -> (i32, i32) {
    %c0_i32 = arith.constant 0 : i32
    %c0_i32_0 = arith.constant 0 : i32
    return %c0_i32, %arg0 : i32, i32
  }
  func.func @transform_1(%arg0: i32) -> (i32, i32) {
    %c0_i32 = arith.constant 0 : i32
    %c0_i32_0 = arith.constant 0 : i32
    %c0_i32_1 = arith.constant 0 : i32
    return %c0_i32, %c0_i32_0 : i32, i32
  }
  func.func @transform_2(%arg0: i32) -> (i32, i32) {
    %c0_i32 = arith.constant 0 : i32
    %c0_i32_0 = arith.constant 0 : i32
    %c0_i32_1 = arith.constant 0 : i32
    return %c0_i32, %c0_i32_0 : i32, i32
  }
  func.func @transform_3(%arg0: i32) -> (i32, i32) {
    %c0_i32 = arith.constant 0 : i32
    %c0_i32_0 = arith.constant 0 : i32
    return %c0_i32, %arg0 : i32, i32
  }
}

</mosaic_0001>

<bundles_post_ra>
// kernel: simple_mlp_forward.1
= control target key start
LH: loop header
LB: loop body
LE: loop exit
PB: predicated region body
PF: predicated region fallthrough
CT: control target
= control target key end

     0   :  { %v2333_v1 = vmov 1   ;;  %v2334_v2 = vmov 0   ;;  %s3758_s0 = inlined_call_operand.vmem [shape: f32[1,1000], index: 0, kind: input, shape index: {}]   ;;  %s3759_s1 = inlined_call_operand.vmem [shape: bf16[128,128], index: 1, kind: input, shape index: {}]   ;;  %s3760_s2 = inlined_call_operand.vmem [shape: f32[128,8], index: 2, kind: input, shape index: {}]   ;;  %s3761_s3 = inlined_call_operand.hbm [shape: f32[1,1000], index: 3, kind: output, shape index: {}]  }
   0x1   :  { %v30_v0 = vld [vmem:[%s3760_s2 + $0x70] sm:$0xff]  ;;  %1757 = vset.pattern.permute.xlu1 %v2333_v1  ;;  %1756 = vset.pattern.permute.xlu0 %v2334_v2  ;;  %v2366_v3 = vld [vmem:[%s3760_s2 + $0x60] sm:$0xff] }
   0x2   :  { %315 = vperm.xlu1 %1757, %v30_v0   ;;  %105 = vperm.xlu0 %1756, %v30_v0  }
   0x3   :  { %8 = vsyncpa [#allocation3], 0  ;;  %1758 = vset.pattern.permute.xlu2 %v2334_v2  ;;  %v31_v4 = vld [vmem:[%s3760_s2 + $0x78] sm:$0xff]  ;;  %v2375_v5 = vld [vmem:[%s3760_s2 + $0x68] sm:$0xff]  ;;  %vm1678_vm0 = vcmask 1040384   ;;  %vm1680_vm1 = vcmask 1042434  }
   0x4   :  { %95 = vperm.xlu2 %1758, %v2366_v3   ;;  %3788 = vst [vmem:[#allocation5_spill] sm:$0xff] %v2375_v5  ;;  %v2381_v6 = vld [vmem:[%s3760_s2 + $0x38] sm:$0xff]  ;;  %v2386_v7 = vld [vmem:[%s3760_s2 + $0x50] sm:$0xff]  ;;  %v2401_v9 = vld [vmem:[%s3760_s2 + $0x40] sm:$0xff]  ;;  %vm1682_vm2 = vcmask 1041408   ;;  %vm1684_vm3 = vcmask 1044484  }
   0x5   :  { %v27_v8 = vld [vmem:[%s3760_s2 + $0x58] sm:$0xff]  ;;  %3789 = vst [vmem:[#allocation6_spill] sm:$0xff] %v2401_v9  ;;  %v2407_v10 = vld [vmem:[%s3760_s2 + $0x48] sm:$0xff]  ;;  %v2415_v11 = vld [vmem:[%s3760_s2 + $0x30] sm:$0xff]  ;;  %vm1686_vm4 = vcmask 1046534   ;;  %vm1688_vm5 = vcmask 1045508  }
   0x6   :  { %v2422_v12 = vld [vmem:[%s3760_s2 + $0x20] sm:$0xff]  ;;  %v2431_v13 = vld [vmem:[%s3760_s2 + $0x18] sm:$0xff]  ;;  %v2438_v14 = vld [vmem:[%s3760_s2 + $0x28] sm:$0xff]  ;;  %s1701_s15 = sshll.u32 %s3761_s3, 4  ;;  %vm1690_vm6 = vcmask 1043456   ;;  %s1702_s15 = int_to_ptr.hbm [resolvable:$true] %s1701_s15 }
   0x7   :  { %v2443_v15 = vld [vmem:[%s3760_s2] sm:$0xff]  ;;  %v2451_v16 = vld [vmem:[%s3760_s2 + $0x10] sm:$0xff]  ;;  %v2462_v17 = vld [vmem:[%s3760_s2 + $0x8] sm:$0xff] }
   0x8   :  { %v2476_v21 = vld [vmem:[%s3758_s0] sm:$0xff] }
   0x9   :  { %v2479_v22 = vperm.slane %v2476_v21, 0  ;;  %v2482_v23 = vperm.slane %v2476_v21, 1  ;;  %v2485_v24 = vperm.slane %v2476_v21, 4  ;;  %v2488_v25 = vperm.slane %v2476_v21, 5 }
   0xa   :  { %319 = vperm.xlu1 %1757, %v31_v4   ;;  %110 = vperm.xlu0 %1756, %v31_v4   ;;  %v2491_v26 = vperm.slane %v2476_v21, 2  ;;  %v2498_v29 = vperm.slane %v2476_v21, 3  ;;  %v2555_v61 = vperm.slane %v2476_v21, 6 }
   0xc   :  { %100 = vperm.xlu2 %1758, %v2375_v5  }
  0x12   :  { %311 = vperm.xlu1 %1757, %v2375_v5   ;;  %70 = vperm.xlu0 %1756, %v2381_v6  }
  0x14   :  { %85 = vperm.xlu2 %1758, %v2386_v7  }
  0x1a   :  { %1759 = vset.pattern.permute.xlu1 %v2334_v2  ;;  %1763 = vset.pattern.permute.xlu0 %v2333_v1 }
  0x1b   :  { %90 = vperm.xlu1 %1759, %v27_v8   ;;  %307 = vperm.xlu0 %1763, %v2366_v3  }
  0x1c   :  { %1760 = vset.pattern.permute.xlu2 %v2333_v1 }
  0x1d   :  { %299 = vperm.xlu2 %1760, %v2386_v7  }
  0x23   :  { %75 = vperm.xlu1 %1759, %v2401_v9   ;;  %303 = vperm.xlu0 %1763, %v27_v8  }
  0x25   :  { %1761 = vset.pattern.permute.xlu2 %v2334_v2 }
  0x26   :  { %80 = vperm.xlu2 %1761, %v2407_v10  }
  0x2b   :  { %1762 = vset.pattern.permute.xlu1 %v2333_v1  ;;  %291 = vperm.xlu0 %1763, %v2401_v9  }
  0x2c   :  { %295 = vperm.xlu1 %1762, %v2407_v10  }
  0x2e   :  { %65 = vperm.xlu2 %1761, %v2415_v11  }
  0x33   :  { %275 = vperm.xlu0 %1763, %v2422_v12  }
  0x34   :  { %283 = vperm.xlu1 %1762, %v2415_v11  }
  0x36   :  { %1764 = vset.pattern.permute.xlu2 %v2333_v1 }
  0x37   :  { %287 = vperm.xlu2 %1764, %v2381_v6  }
  0x3b   :  { %271 = vperm.xlu0 %1763, %v2431_v13  }
  0x3c   :  { %1765 = vset.pattern.permute.xlu1 %v2334_v2 }
  0x3d   :  { %55 = vperm.xlu1 %1765, %v2422_v12  }
  0x3f   :  { %1766 = vset.pattern.permute.xlu2 %v2334_v2 }
  0x40   :  { %60 = vperm.xlu2 %1766, %v2438_v14  }
  0x43   :  { %259 = vperm.xlu0 %1763, %v2443_v15  }
  0x45   :  { %1767 = vset.pattern.permute.xlu1 %v2333_v1 }
  0x46   :  { %279 = vperm.xlu1 %1767, %v2438_v14  }
  0x48   :  { %45 = vperm.xlu2 %1766, %v2451_v16  }
  0x4e   :  { %1768 = vset.pattern.permute.xlu1 %v2334_v2 }
  0x4f   :  { %50 = vperm.xlu1 %1768, %v2431_v13  }
  0x50   :  { %1769 = vset.pattern.permute.xlu2 %v2333_v1 }
  0x51   :  { %267 = vperm.xlu2 %1769, %v2451_v16  }
  0x57   :  { %35 = vperm.xlu1 %1768, %v2443_v15  }
  0x59   :  { %1770 = vset.pattern.permute.xlu2 %v2334_v2 }
  0x5a   :  { %40 = vperm.xlu2 %1770, %v2462_v17  }
  0x5e   :  { %v2465_v18 = vpop.permute.xlu2 %95 }
  0x5f   :  { %1771 = vset.pattern.permute.xlu1 %v2333_v1 }
  0x60   :  { %263 = vperm.xlu1 %1771, %v2462_v17  }
  0x66   :  { %v2469_v19 = vpop.permute.xlu2 %100 }
  0x67   :  { %v234_v1 = vmul.f32 %v2479_v22, %v2469_v19 }
  0x6e   :  { %v2471_v20 = vpop.permute.xlu2 %85 }
  0x6f   :  { %v210_v49 = vmul.f32 %v2479_v22, %v2471_v20  ;;  %v211_v59 = vmul.f32 %v2482_v23, %v2471_v20 }
  0x74   :  { %v2493_v27 = vpop.permute.xlu1 %315  ;;  %v2495_v28 = vpop.permute.xlu0 %105 }
  0x75   :  { %v242_v30 = vmul.f32 %v2479_v22, %v2495_v28  ;;  %v243_v31 = vmul.f32 %v2482_v23, %v2495_v28  ;;  %v246_v32 = vmul.f32 %v2485_v24, %v2495_v28  ;;  %v247_v33 = vmul.f32 %v2488_v25, %v2495_v28 }
  0x76   :  { %v244_v35 = vmul.f32 %v2491_v26, %v2495_v28  ;;  %v245_v37 = vmul.f32 %v2498_v29, %v2495_v28  ;;  %v248_v4 = vmul.f32 %v2555_v61, %v2495_v28 }
  0x77   :  { %v2508_v34 = vpop.permute.xlu2 %299  ;;  %v434_v36 = vadd.f32 %v2493_v27, %v242_v30  ;;  %v2516_v38 = vadd.f32 %v2493_v27, %v246_v32  ;;  %v2519_v39 = vadd.f32 %v2493_v27, %v247_v33  ;;  %v435_v40 = vadd.f32 %v2493_v27, %v243_v31 }
  0x78   :  { %3790 = vst [vmem:[#allocation7_spill] sm:$0xff] %v2508_v34  ;;  %v436_v41 = vadd.f32 %v2493_v27, %v244_v35  ;;  %v437_v44 = vadd.f32 %v2493_v27, %v245_v37  ;;  %v402_v2 = vadd.f32 %v2508_v34, %v210_v49  ;;  %v235_v30 = vmul.f32 %v2482_v23, %v2469_v19 }
  0x79   :  { %1779 = vtanh.f32 %v434_v36  ;;  %v403_v31 = vadd.f32 %v2508_v34, %v211_v59  ;;  %v2572_v37 = vadd.f32 %v2493_v27, %v248_v4  ;;  %v228_v59 = vmul.f32 %v2491_v26, %v2465_v18 }
  0x7a   :  { %1781 = vtanh.f32 %v435_v40  ;;  %v212_v4 = vmul.f32 %v2491_v26, %v2471_v20 }
  0x7b   :  { %1783 = vtanh.f32 %v436_v41 }
  0x7c   :  { %v2523_v42 = vpop.permute.xlu1 %319  ;;  %v2525_v43 = vpop.permute.xlu0 %110  ;;  %1785 = vtanh.f32 %v437_v44 }
  0x7d   :  { %v250_v45 = vmul.f32 %v2479_v22, %v2525_v43  ;;  %v251_v46 = vmul.f32 %v2482_v23, %v2525_v43  ;;  %v252_v47 = vmul.f32 %v2491_v26, %v2525_v43  ;;  %v253_v48 = vmul.f32 %v2498_v29, %v2525_v43 }
  0x7e   :  { %v254_v50 = vmul.f32 %v2485_v24, %v2525_v43  ;;  %v255_v51 = vmul.f32 %v2488_v25, %v2525_v43 }
  0x7f   :  { %v442_v52 = vadd.f32 %v2523_v42, %v250_v45  ;;  %v443_v53 = vadd.f32 %v2523_v42, %v251_v46  ;;  %v444_v54 = vadd.f32 %v2523_v42, %v252_v47  ;;  %v445_v56 = vadd.f32 %v2523_v42, %v253_v48  ;;  %v1780_v60 = vpop.eup %1779 }
  0x80   :  { %v2545_v55 = vpop.permute.xlu2 %80  ;;  %v446_v57 = vadd.f32 %v2523_v42, %v254_v50  ;;  %v2550_v58 = vadd.f32 %v2523_v42, %v255_v51  ;;  %v1782_v62 = vpop.eup %1781  ;;  %v236_v45 = vmul.f32 %v2491_v26, %v2469_v19  ;;  %v237_v48 = vmul.f32 %v2498_v29, %v2469_v19 }
  0x81   :  { %1787 = vtanh.f32 %v442_v52  ;;  %v1784_v8 = vpop.eup %1783 }
  0x82   :  { %1789 = vtanh.f32 %v443_v53  ;;  %v1786_v32 = vpop.eup %1785  ;;  %v226_v53 = vmul.f32 %v2479_v22, %v2465_v18 }
  0x83   :  { %1791 = vtanh.f32 %v444_v54 }
  0x84   :  { %v2557_v63 = vpop.permute.xlu1 %311  ;;  %v2559_v0 = vpop.permute.xlu0 %70  ;;  %1793 = vtanh.f32 %v445_v56  ;;  %v227_v56 = vmul.f32 %v2482_v23, %v2465_v18 }
  0x85   :  { %3791 = vst [vmem:[#allocation8_spill] sm:$0xff] %v2559_v0  ;;  %v426_v33 = vadd.f32 %v2557_v63, %v234_v1  ;;  %v427_v36 = vadd.f32 %v2557_v63, %v235_v30  ;;  %1795 = vtanh.f32 %v402_v2  ;;  %v428_v51 = vadd.f32 %v2557_v63, %v236_v45 }
  0x86   :  { %1797 = vtanh.f32 %v403_v31  ;;  %v429_v54 = vadd.f32 %v2557_v63, %v237_v48  ;;  %v229_v2 = vmul.f32 %v2498_v29, %v2465_v18  ;;  %v189_v5 = vmul.f32 %v2498_v29, %v2559_v0 }
  0x87   :  { %v1788_v35 = vpop.eup %1787  ;;  %1799 = vtanh.f32 %v426_v33 }
  0x88   :  { %v1790_v40 = vpop.eup %1789  ;;  %v650_v41 = vpack.c.bf16 %v1788_v35, %v1780_v60  ;;  %v2574_v44 = vpop.permute.xlu2 %65  ;;  %1801 = vtanh.f32 %v427_v36  ;;  %v256_v60 = vmul.f32 %v2555_v61, %v2525_v43  ;;  %v213_v35 = vmul.f32 %v2498_v29, %v2471_v20 }
  0x89   :  { %3792 = vst [vmem:[#allocation9_spill] sm:$0xff] %v2574_v44  ;;  %v1792_v46 = vpop.eup %1791  ;;  %v651_v47 = vpack.c.bf16 %v1790_v40, %v1782_v62  ;;  %1803 = vtanh.f32 %v2516_v38 }
  0x8a   :  { %v1794_v49 = vpop.eup %1793  ;;  %770 = vmatpush.bf16.msra.mxu0 %v650_v41  ;;  %v652_v50 = vpack.c.bf16 %v1792_v46, %v1784_v8  ;;  %1805 = vtanh.f32 %v446_v57  ;;  %v2610_v57 = vadd.f32 %v2523_v42, %v256_v60  ;;  %v404_v41 = vadd.f32 %v2508_v34, %v212_v4 }
  0x8b   :  { %819 = vmatpush.bf16.msra.mxu1 %v651_v47  ;;  %v653_v52 = vpack.c.bf16 %v1794_v49, %v1786_v32  ;;  %v2599_v8 = vpop.eup %1795  ;;  %1807 = vtanh.f32 %v428_v51  ;;  %v405_v48 = vadd.f32 %v2508_v34, %v213_v35  ;;  %v186_v49 = vmul.f32 %v2479_v22, %v2559_v0 }
  0x8c   :  { %868 = vmatpush.bf16.msra.mxu2 %v652_v50  ;;  %v2604_v32 = vpop.eup %1797  ;;  %1809 = vtanh.f32 %v429_v54  ;;  %v2623_v50 = vperm.slane %v2476_v21, 7  ;;  %v187_v4 = vmul.f32 %v2482_v23, %v2559_v0 }
  0x8d   :  { %917 = vmatpush.bf16.msra.mxu3 %v653_v52  ;;  %v2591_v62 = vpop.permute.xlu1 %90  ;;  %v2593_v1 = vpop.permute.xlu0 %307 }
  0x8e   :  { %v418_v30 = vadd.f32 %v2593_v1, %v226_v53  ;;  %v419_v38 = vadd.f32 %v2593_v1, %v227_v56  ;;  %v420_v31 = vadd.f32 %v2593_v1, %v228_v59  ;;  %v421_v33 = vadd.f32 %v2593_v1, %v229_v2  ;;  %v1800_v36 = vpop.eup %1799 }
  0x8f   :  { %v1802_v40 = vpop.eup %1801  ;;  %v218_v52 = vmul.f32 %v2479_v22, %v2591_v62  ;;  %v219_v53 = vmul.f32 %v2482_v23, %v2591_v62  ;;  %v220_v54 = vmul.f32 %v2491_v26, %v2591_v62  ;;  %v221_v21 = vmul.f32 %v2498_v29, %v2591_v62 }
  0x90   :  { %1811 = vtanh.f32 %v418_v30  ;;  %v2613_v45 = vpop.eup %1803  ;;  %v249_v30 = vmul.f32 %v2623_v50, %v2495_v28  ;;  %v188_v56 = vmul.f32 %v2491_v26, %v2559_v0 }
  0x91   :  { %1813 = vtanh.f32 %v419_v38  ;;  %3793 = vst [vmem:[#allocation10_spill] sm:$0xff] %v2613_v45  ;;  %v2615_v46 = vpop.permute.xlu2 %287  ;;  %v2617_v47 = vpop.eup %1805 }
  0x92   :  { %3794 = vst [vmem:[#allocation11_spill] sm:$0xff] %v2615_v46  ;;  %1815 = vtanh.f32 %v420_v31  ;;  %v1808_v51 = vpop.eup %1807 }
  0x93   :  { %3795 = vst [vmem:[#allocation12_spill] sm:$0xff] %v2617_v47  ;;  %1817 = vtanh.f32 %v421_v33  ;;  %v1810_v59 = vpop.eup %1809 }
  0x94   :  { %1819 = vtanh.f32 %v404_v41 }
  0x95   :  { %v2633_v60 = vpop.permute.xlu1 %75  ;;  %v2635_v2 = vpop.permute.xlu0 %303  ;;  %1821 = vtanh.f32 %v405_v48 }
  0x96   :  { %v1812_v38 = vpop.eup %1811  ;;  %v410_v31 = vadd.f32 %v2635_v2, %v218_v52  ;;  %v411_v33 = vadd.f32 %v2635_v2, %v219_v53  ;;  %v412_v35 = vadd.f32 %v2635_v2, %v220_v54  ;;  %v413_v47 = vadd.f32 %v2635_v2, %v221_v21 }
  0x97   :  { %v1814_v41 = vpop.eup %1813  ;;  %v642_v45 = vpack.c.bf16 %v1800_v36, %v1812_v38  ;;  %v378_v52 = vadd.f32 %v2615_v46, %v186_v49  ;;  %v2653_v53 = vadd.f32 %v2493_v27, %v249_v30  ;;  %v379_v36 = vadd.f32 %v2615_v46, %v187_v4 }
  0x98   :  { %v1816_v34 = vpop.eup %1815  ;;  %v643_v28 = vpack.c.bf16 %v1802_v40, %v1814_v41  ;;  %1823 = vtanh.f32 %v410_v31  ;;  %v380_v38 = vadd.f32 %v2615_v46, %v188_v56  ;;  %v202_v27 = vmul.f32 %v2479_v22, %v2545_v55 }
  0x99   :  { %v1818_v54 = vpop.eup %1817  ;;  %771 = vmatpush.bf16.msra.mxu0 %v642_v45  ;;  %v644_v9 = vpack.c.bf16 %v1808_v51, %v1816_v34  ;;  %1825 = vtanh.f32 %v411_v33  ;;  %v203_v45 = vmul.f32 %v2482_v23, %v2545_v55  ;;  %v381_v34 = vadd.f32 %v2615_v46, %v189_v5 }
  0x9a   :  { %820 = vmatpush.bf16.msra.mxu1 %v643_v28  ;;  %v645_v21 = vpack.c.bf16 %v1810_v59, %v1818_v54  ;;  %1827 = vtanh.f32 %v412_v35  ;;  %v2656_v48 = vpop.permute.xlu2 %60  ;;  %v1820_v40 = vpop.eup %1819  ;;  %v194_v49 = vmul.f32 %v2479_v22, %v2633_v60  ;;  %v195_v51 = vmul.f32 %v2482_v23, %v2633_v60 }
  0x9b   :  { %869 = vmatpush.bf16.msra.mxu2 %v644_v9  ;;  %1829 = vtanh.f32 %v413_v47  ;;  %v257_v9 = vmul.f32 %v2623_v50, %v2525_v43  ;;  %v1822_v47 = vpop.eup %1821  ;;  %v196_v59 = vmul.f32 %v2491_v26, %v2633_v60  ;;  %v204_v5 = vmul.f32 %v2491_v26, %v2545_v55 }
  0x9c   :  { %918 = vmatpush.bf16.msra.mxu3 %v645_v21  ;;  %1831 = vtanh.f32 %v378_v52  ;;  %v205_v4 = vmul.f32 %v2498_v29, %v2545_v55  ;;  %v197_v35 = vmul.f32 %v2498_v29, %v2633_v60 }
  0x9d   :  { %v2670_v56 = vpop.permute.xlu0 %291  ;;  %1833 = vtanh.f32 %v379_v36 }
  0x9e   :  { %v1824_v30 = vpop.eup %1823  ;;  %v2678_v31 = vpop.permute.xlu1 %295  ;;  %v386_v33 = vadd.f32 %v2670_v56, %v194_v49  ;;  %v387_v43 = vadd.f32 %v2670_v56, %v195_v51  ;;  %1835 = vtanh.f32 %v380_v38  ;;  %v388_v49 = vadd.f32 %v2670_v56, %v196_v59 }
  0x9f   :  { %v1826_v41 = vpop.eup %1825  ;;  %v634_v28 = vpack.c.bf16 %v1824_v30, %v2599_v8  ;;  %v394_v52 = vadd.f32 %v2678_v31, %v202_v27  ;;  %v395_v54 = vadd.f32 %v2678_v31, %v203_v45  ;;  %1837 = vtanh.f32 %v381_v34 }
  0xa0   :  { %v1828_v36 = vpop.eup %1827  ;;  %v635_v21 = vpack.c.bf16 %v1826_v41, %v2604_v32  ;;  %1839 = vtanh.f32 %v386_v33  ;;  %v2690_v51 = vadd.f32 %v2523_v42, %v257_v9  ;;  %v396_v8 = vadd.f32 %v2678_v31, %v204_v5 }
  0xa1   :  { %v1830_v46 = vpop.eup %1829  ;;  %772 = vmatpush.bf16.msra.mxu0 %v634_v28  ;;  %v636_v38 = vpack.c.bf16 %v1828_v36, %v1820_v40  ;;  %1841 = vtanh.f32 %v394_v52  ;;  %v389_v45 = vadd.f32 %v2670_v56, %v197_v35  ;;  %v238_v34 = vmul.f32 %v2485_v24, %v2469_v19 }
  0xa2   :  { %v2693_v30 = vpop.eup %1831  ;;  %821 = vmatpush.bf16.msra.mxu1 %v635_v21  ;;  %v637_v27 = vpack.c.bf16 %v1830_v46, %v1822_v47  ;;  %1843 = vtanh.f32 %v387_v43  ;;  %v2696_v32 = vpop.permute.xlu2 %45  ;;  %v397_v40 = vadd.f32 %v2678_v31, %v205_v4  ;;  %v178_v46 = vmul.f32 %v2479_v22, %v2574_v44 }
  0xa3   :  { %3796 = vst [vmem:[#allocation13_spill] sm:$0xff] %v2696_v32  ;;  %v2700_v42 = vpop.eup %1833  ;;  %870 = vmatpush.bf16.msra.mxu2 %v636_v38  ;;  %1845 = vtanh.f32 %v395_v54  ;;  %v179_v59 = vmul.f32 %v2482_v23, %v2574_v44  ;;  %v180_v5 = vmul.f32 %v2491_v26, %v2574_v44  ;;  %v239_v33 = vmul.f32 %v2488_v25, %v2469_v19 }
  0xa4   :  { %v2703_v9 = vpop.eup %1835  ;;  %919 = vmatpush.bf16.msra.mxu3 %v637_v27  ;;  %1847 = vtanh.f32 %v388_v49  ;;  %v181_v35 = vmul.f32 %v2498_v29, %v2574_v44  ;;  %v240_v41 = vmul.f32 %v2555_v61, %v2469_v19  ;;  %v241_v28 = vmul.f32 %v2623_v50, %v2469_v19 }
  0xa5   :  { %v2707_v47 = vpop.eup %1837  ;;  %1849 = vtanh.f32 %v396_v8  ;;  %v146_v27 = vmul.f32 %v2479_v22, %v2696_v32  ;;  %v147_v19 = vmul.f32 %v2482_v23, %v2696_v32 }
  0xa6   :  { %v1840_v4 = vpop.eup %1839  ;;  %v2715_v43 = vpop.permute.xlu1 %283  ;;  %1851 = vtanh.f32 %v389_v45 }
  0xa7   :  { %3797 = vst [vmem:[#allocation14_spill] sm:$0xff] %v2715_v43  ;;  %v1842_v52 = vpop.eup %1841  ;;  %1853 = vtanh.f32 %v397_v40  ;;  %v370_v54 = vadd.f32 %v2715_v43, %v178_v46  ;;  %v371_v36 = vadd.f32 %v2715_v43, %v179_v59  ;;  %v372_v21 = vadd.f32 %v2715_v43, %v180_v5 }
  0xa8   :  { %v1844_v49 = vpop.eup %1843  ;;  %v626_v38 = vpack.c.bf16 %v1842_v52, %v1840_v4  ;;  %v373_v8 = vadd.f32 %v2715_v43, %v181_v35  ;;  %1855 = vtanh.f32 %v2519_v39  ;;  %v148_v59 = vmul.f32 %v2491_v26, %v2696_v32 }
  0xa9   :  { %v1846_v45 = vpop.eup %1845  ;;  %1857 = vtanh.f32 %v370_v54  ;;  %v149_v5 = vmul.f32 %v2498_v29, %v2696_v32  ;;  %v2739_v39 = vadd.f32 %v2557_v63, %v238_v34  ;;  %v2742_v52 = vadd.f32 %v2557_v63, %v239_v33 }
  0xaa   :  { %v1848_v40 = vpop.eup %1847  ;;  %773 = vmatpush.bf16.msra.mxu0 %v626_v38  ;;  %v627_v46 = vpack.c.bf16 %v1846_v45, %v1844_v49  ;;  %1859 = vtanh.f32 %v371_v36  ;;  %v2745_v54 = vadd.f32 %v2557_v63, %v240_v41  ;;  %v170_v33 = vmul.f32 %v2479_v22, %v2656_v48 }
  0xab   :  { %v1850_v4 = vpop.eup %1849  ;;  %1861 = vtanh.f32 %v372_v21  ;;  %v2736_v35 = vpop.permute.xlu2 %267 }
  0xac   :  { %3798 = vst [vmem:[#allocation15_spill] sm:$0xff] %v2736_v35  ;;  %v1852_v36 = vpop.eup %1851  ;;  %822 = vmatpush.bf16.msra.mxu1 %v627_v46  ;;  %v628_v49 = vpack.c.bf16 %v1850_v4, %v1848_v40  ;;  %1863 = vtanh.f32 %v373_v8  ;;  %v338_v38 = vadd.f32 %v2736_v35, %v146_v27  ;;  %v339_v21 = vadd.f32 %v2736_v35, %v147_v19 }
  0xad   :  { %3799 = vst [vmem:[#allocation16_spill] sm:$0xff] %v2745_v54  ;;  %v1854_v45 = vpop.eup %1853  ;;  %1865 = vtanh.f32 %v2550_v58  ;;  %v340_v41 = vadd.f32 %v2736_v35, %v148_v59  ;;  %v230_v40 = vmul.f32 %v2485_v24, %v2465_v18  ;;  %v341_v27 = vadd.f32 %v2736_v35, %v149_v5 }
  0xae   :  { %v2750_v32 = vpop.eup %1855  ;;  %871 = vmatpush.bf16.msra.mxu2 %v628_v49  ;;  %v629_v34 = vpack.c.bf16 %v1854_v45, %v1852_v36  ;;  %1867 = vtanh.f32 %v338_v38  ;;  %v231_v58 = vmul.f32 %v2488_v25, %v2465_v18  ;;  %v232_v19 = vmul.f32 %v2555_v61, %v2465_v18  ;;  %v2771_v45 = vpop.permute.xlu0 %275 }
  0xaf   :  { %v1858_v8 = vpop.eup %1857  ;;  %v2757_v46 = vpop.permute.xlu1 %55  ;;  %1869 = vtanh.f32 %v339_v21 }
  0xb0   :  { %v1860_v4 = vpop.eup %1859  ;;  %920 = vmatpush.bf16.msra.mxu3 %v629_v34  ;;  %v618_v36 = vpack.c.bf16 %v2693_v30, %v1858_v8  ;;  %v162_v59 = vmul.f32 %v2479_v22, %v2757_v46  ;;  %v163_v49 = vmul.f32 %v2482_v23, %v2757_v46  ;;  %v164_v38 = vmul.f32 %v2491_v26, %v2757_v46 }
  0xb1   :  { %v1862_v5 = vpop.eup %1861  ;;  %v619_v35 = vpack.c.bf16 %v2700_v42, %v1860_v4  ;;  %v165_v0 = vmul.f32 %v2498_v29, %v2757_v46  ;;  %v2777_v30 = vadd.f32 %v2557_v63, %v241_v28  ;;  %1871 = vtanh.f32 %v340_v41 }
  0xb2   :  { %v1864_v34 = vpop.eup %1863  ;;  %774 = vmatpush.bf16.msra.mxu0 %v618_v36  ;;  %v620_v8 = vpack.c.bf16 %v2703_v9, %v1862_v5  ;;  %v354_v43 = vadd.f32 %v2771_v45, %v162_v59  ;;  %v355_v44 = vadd.f32 %v2771_v45, %v163_v49  ;;  %v356_v4 = vadd.f32 %v2771_v45, %v164_v38 }
  0xb3   :  { %v2782_v54 = vpop.eup %1865  ;;  %823 = vmatpush.bf16.msra.mxu1 %v619_v35  ;;  %v621_v42 = vpack.c.bf16 %v2707_v47, %v1864_v34  ;;  %v357_v21 = vadd.f32 %v2771_v45, %v165_v0  ;;  %1873 = vtanh.f32 %v341_v27  ;;  %v2335_v63 = vmov 2  }
  0xb4   :  { %872 = vmatpush.bf16.msra.mxu2 %v620_v8  ;;  %1774 = vset.pattern.permute.xlu1 %v2335_v63  ;;  %v655_v9 = vpack.c.bf16 %v2782_v54, %v2750_v32  ;;  %v422_v28 = vadd.f32 %v2593_v1, %v230_v40  ;;  %v2791_v41 = vadd.f32 %v2593_v1, %v231_v58  ;;  %v2793_v36 = vpop.eup %1867  ;;  %1875 = vtanh.f32 %v354_v43 }
  0xb5   :  { %921 = vmatpush.bf16.msra.mxu3 %v621_v42  ;;  %v171_v47 = vmul.f32 %v2482_v23, %v2656_v48  ;;  %v172_v0 = vmul.f32 %v2491_v26, %v2656_v48  ;;  %667 = vperm.xlu1 %1774, %v2451_v16   ;;  %v2801_v35 = vadd.f32 %v2593_v1, %v232_v19  ;;  %1877 = vtanh.f32 %v355_v44  ;;  %v2805_v27 = vpop.eup %1869 }
  0xb6   :  { %v173_v40 = vmul.f32 %v2498_v29, %v2656_v48  ;;  %1773 = vset.pattern.permute.xlu0 %v2335_v63  ;;  %1772 = vset.pattern.permute.xlu2 %v2335_v63  ;;  %1879 = vtanh.f32 %v356_v4  ;;  %v233_v16 = vmul.f32 %v2623_v50, %v2465_v18  ;;  %v2837_v8 = vpop.permute.xlu0 %271 }
  0xb7   :  { %663 = vperm.xlu0 %1773, %v2462_v17   ;;  %659 = vperm.xlu2 %1772, %v2443_v15   ;;  %v2809_v43 = vpop.eup %1871  ;;  %1881 = vtanh.f32 %v357_v21 }
  0xb8   :  { %v2811_v58 = vpop.permute.xlu1 %279  ;;  %1883 = vtanh.f32 %v2572_v37  ;;  %v2824_v17 = vadd.f32 %v2593_v1, %v233_v16 }
  0xb9   :  { %v362_v44 = vadd.f32 %v2811_v58, %v170_v33  ;;  %v363_v19 = vadd.f32 %v2811_v58, %v171_v47  ;;  %v364_v59 = vadd.f32 %v2811_v58, %v172_v0  ;;  %v2819_v49 = vpop.eup %1873  ;;  %v365_v15 = vadd.f32 %v2811_v58, %v173_v40 }
  0xba   :  { %1885 = vtanh.f32 %v2610_v57  ;;  %v1876_v38 = vpop.eup %1875  ;;  %v222_v57 = vmul.f32 %v2485_v24, %v2591_v62 }
  0xbb   :  { %1887 = vtanh.f32 %v362_v44  ;;  %v1878_v18 = vpop.eup %1877 }
  0xbc   :  { %1889 = vtanh.f32 %v363_v19  ;;  %v1880_v33 = vpop.eup %1879  ;;  %v2855_v19 = vpop.permute.xlu2 %40 }
  0xbd   :  { %1891 = vtanh.f32 %v364_v59  ;;  %675 = vperm.xlu1 %1774, %v2422_v12   ;;  %v1882_v5 = vpop.eup %1881 }
  0xbe   :  { %1893 = vtanh.f32 %v365_v15  ;;  %v2827_v37 = vpop.eup %1883 }
  0xbf   :  { %1895 = vtanh.f32 %v2653_v53  ;;  %683 = vperm.xlu0 %1773, %v2415_v11   ;;  %671 = vperm.xlu2 %1772, %v2431_v13  }
  0xc0   :  { %v2832_v1 = vpop.eup %1885  ;;  %1897 = vtanh.f32 %v2690_v51 }
  0xc1   :  { %v1888_v34 = vpop.eup %1887  ;;  %v2839_v12 = vpop.permute.xlu1 %50  ;;  %1899 = vtanh.f32 %v422_v28 }
  0xc2   :  { %v1890_v53 = vpop.eup %1889  ;;  %v610_v11 = vpack.c.bf16 %v1888_v34, %v1876_v38  ;;  %v154_v13 = vmul.f32 %v2479_v22, %v2839_v12  ;;  %v155_v51 = vmul.f32 %v2482_v23, %v2839_v12  ;;  %v156_v4 = vmul.f32 %v2491_v26, %v2839_v12 }
  0xc3   :  { %v1892_v21 = vpop.eup %1891  ;;  %v611_v63 = vpack.c.bf16 %v1890_v53, %v1878_v18  ;;  %v157_v47 = vmul.f32 %v2498_v29, %v2839_v12  ;;  %1901 = vtanh.f32 %v2739_v39  ;;  %v2866_v18 = vmul.f32 %v2485_v24, %v2471_v20 }
  0xc4   :  { %v1894_v0 = vpop.eup %1893  ;;  %775 = vmatpush.bf16.msra.mxu0 %v610_v11  ;;  %v612_v28 = vpack.c.bf16 %v1892_v21, %v1880_v33  ;;  %v346_v40 = vadd.f32 %v2837_v8, %v154_v13  ;;  %v347_v16 = vadd.f32 %v2837_v8, %v155_v51  ;;  %v348_v44 = vadd.f32 %v2837_v8, %v156_v4 }
  0xc5   :  { %v2857_v59 = vpop.eup %1895  ;;  %824 = vmatpush.bf16.msra.mxu1 %v611_v63  ;;  %v613_v15 = vpack.c.bf16 %v1894_v0, %v1882_v5  ;;  %v349_v38 = vadd.f32 %v2837_v8, %v157_v47  ;;  %687 = vperm.xlu1 %1774, %v2381_v6   ;;  %1903 = vtanh.f32 %v2791_v41  ;;  %v2869_v33 = vadd.f32 %v2635_v2, %v222_v57 }
  0xc6   :  { %v2862_v39 = vpop.eup %1897  ;;  %873 = vmatpush.bf16.msra.mxu2 %v612_v28  ;;  %1905 = vtanh.f32 %v346_v40  ;;  %v2875_v6 = vmul.f32 %v2479_v22, %v2855_v19  ;;  %v2881_v5 = vmul.f32 %v2488_v25, %v2471_v20  ;;  %v2886_v57 = vmul.f32 %v2482_v23, %v2855_v19  ;;  %v2915_v40 = vpop.permute.xlu0 %259 }
  0xc7   :  { %v2871_v34 = vpop.eup %1899  ;;  %922 = vmatpush.bf16.msra.mxu3 %v613_v15  ;;  %1907 = vtanh.f32 %v347_v16  ;;  %695 = vperm.xlu0 %1773, %v2407_v10   ;;  %v2890_v53 = vmul.f32 %v2491_v26, %v2855_v19  ;;  %v223_v11 = vmul.f32 %v2488_v25, %v2591_v62  ;;  %v141_v10 = vmul.f32 %v2498_v29, %v2855_v19 }
  0xc8   :  { %1909 = vtanh.f32 %v348_v44  ;;  %679 = vperm.xlu2 %1772, %v2438_v14   ;;  %v224_v4 = vmul.f32 %v2555_v61, %v2591_v62  ;;  %v225_v21 = vmul.f32 %v2623_v50, %v2591_v62  ;;  %v3810_v54 = vpack.c.bf16 %v2862_v39, %v2857_v59 }
  0xc9   :  { %v2895_v13 = vpop.eup %1901  ;;  %v2897_v51 = vpop.permute.xlu1 %35  ;;  %1911 = vtanh.f32 %v349_v38 }
  0xca   :  { %v130_v63 = vmul.f32 %v2479_v22, %v2897_v51  ;;  %v131_v14 = vmul.f32 %v2482_v23, %v2897_v51  ;;  %v132_v47 = vmul.f32 %v2491_v26, %v2897_v51  ;;  %v133_v0 = vmul.f32 %v2498_v29, %v2897_v51 }
  0xcb   :  { %v2913_v28 = vpop.eup %1903  ;;  %1913 = vtanh.f32 %v2742_v52  ;;  %v2921_v22 = vadd.f32 %v2635_v2, %v223_v11  ;;  %v2924_v23 = vadd.f32 %v2635_v2, %v224_v4  ;;  %v2933_v52 = vadd.f32 %v2635_v2, %v225_v21 }
  0xcc   :  { %v1906_v62 = vpop.eup %1905  ;;  %v322_v26 = vadd.f32 %v2915_v40, %v130_v63  ;;  %v323_v29 = vadd.f32 %v2915_v40, %v131_v14  ;;  %v324_v44 = vadd.f32 %v2915_v40, %v132_v47  ;;  %v325_v15 = vadd.f32 %v2915_v40, %v133_v0 }
  0xcd   :  { %v1908_v38 = vpop.eup %1907  ;;  %v602_v16 = vpack.c.bf16 %v1906_v62, %v2793_v36  ;;  %1915 = vtanh.f32 %v2801_v35  ;;  %699 = vperm.xlu1 %1774, %v2386_v7   ;;  %v198_v11 = vmul.f32 %v2485_v24, %v2633_v60  ;;  %v206_v14 = vmul.f32 %v2485_v24, %v2545_v55 }
  0xce   :  { %v1910_v4 = vpop.eup %1909  ;;  %v603_v63 = vpack.c.bf16 %v1908_v38, %v2805_v27  ;;  %1917 = vtanh.f32 %v322_v26  ;;  %v199_v36 = vmul.f32 %v2488_v25, %v2633_v60  ;;  %v207_v35 = vmul.f32 %v2488_v25, %v2545_v55 }
  0xcf   :  { %v1912_v47 = vpop.eup %1911  ;;  %776 = vmatpush.bf16.msra.mxu0 %v602_v16  ;;  %v604_v2 = vpack.c.bf16 %v1910_v4, %v2809_v43  ;;  %1919 = vtanh.f32 %v323_v29  ;;  %v2945_v7 = vadd.f32 %v2670_v56, %v198_v11  ;;  %707 = vperm.xlu0 %1773, %v2366_v3   ;;  %v2952_v21 = vadd.f32 %v2678_v31, %v206_v14  ;;  %v3800_v43 = vld [vmem:[#allocation6_spill] sm:$0xff] }
  0xd0   :  { %825 = vmatpush.bf16.msra.mxu1 %v603_v63  ;;  %v605_v27 = vpack.c.bf16 %v1912_v47, %v2819_v49  ;;  %1921 = vtanh.f32 %v324_v44  ;;  %v2955_v0 = vadd.f32 %v2670_v56, %v199_v36  ;;  %691 = vperm.xlu2 %1772, %v3800_v43   ;;  %v2961_v62 = vadd.f32 %v2678_v31, %v207_v35  ;;  %v3801_v44 = vld [vmem:[#allocation16_spill] sm:$0xff] }
  0xd1   :  { %v2958_v16 = vpop.eup %1913  ;;  %874 = vmatpush.bf16.msra.mxu2 %v604_v2  ;;  %1923 = vtanh.f32 %v325_v15  ;;  %v200_v3 = vmul.f32 %v2555_v61, %v2633_v60  ;;  %v208_v49 = vmul.f32 %v2555_v61, %v2545_v55  ;;  %v201_v15 = vmul.f32 %v2623_v50, %v2633_v60 }
  0xd2   :  { %923 = vmatpush.bf16.msra.mxu3 %v605_v27  ;;  %v2967_v26 = vpop.permute.xlu1 %263  ;;  %1925 = vtanh.f32 %v3801_v44  ;;  %v209_v38 = vmul.f32 %v2623_v50, %v2545_v55  ;;  %v3804_v27 = vld [vmem:[#allocation5_spill] sm:$0xff]  ;;  %v3805_v44 = vld [vmem:[#allocation14_spill] sm:$0xff]  ;;  %v3812_v59 = vpack.c.bf16 %v2895_v13, %v2871_v34 }
  0xd3   :  { %v2976_v11 = vpop.eup %1915  ;;  %v330_v4 = vadd.f32 %v2967_v26, %v2875_v6  ;;  %v331_v63 = vadd.f32 %v2967_v26, %v2886_v57  ;;  %v332_v14 = vadd.f32 %v2967_v26, %v2890_v53  ;;  %v333_v36 = vadd.f32 %v2967_v26, %v141_v10  ;;  %v3802_v57 = vld [vmem:[#allocation7_spill] sm:$0xff]  ;;  %v3803_v10 = vld [vmem:[#allocation9_spill] sm:$0xff]  ;;  %v3105_v34 = vld [vmem:[%s3760_s2 + $0x70] sm:$0xff] }
  0xd4   :  { %v1918_v47 = vpop.eup %1917  ;;  %1927 = vtanh.f32 %v2824_v17  ;;  %v2987_v60 = vadd.f32 %v2670_v56, %v200_v3  ;;  %v2990_v55 = vadd.f32 %v2678_v31, %v208_v49  ;;  %v2993_v2 = vadd.f32 %v2670_v56, %v201_v15 }
  0xd5   :  { %v1920_v6 = vpop.eup %1919  ;;  %1929 = vtanh.f32 %v330_v4  ;;  %v406_v35 = vadd.f32 %v3802_v57, %v2866_v18  ;;  %v2998_v53 = vadd.f32 %v2678_v31, %v209_v38  ;;  %v182_v17 = vmul.f32 %v2485_v24, %v3803_v10  ;;  %711 = vperm.xlu1 %1774, %v3804_v27   ;;  %v3017_v38 = vld [vmem:[%s3760_s2 + $0x78] sm:$0xff] }
  0xd6   :  { %v1922_v43 = vpop.eup %1921  ;;  %1931 = vtanh.f32 %v331_v63  ;;  %v216_v3 = vmul.f32 %v2555_v61, %v2471_v20  ;;  %v183_v56 = vmul.f32 %v2488_v25, %v3803_v10  ;;  %v184_v49 = vmul.f32 %v2555_v61, %v3803_v10 }
  0xd7   :  { %v1924_v18 = vpop.eup %1923  ;;  %1933 = vtanh.f32 %v332_v14  ;;  %v407_v31 = vadd.f32 %v3802_v57, %v2881_v5  ;;  %v3012_v15 = vadd.f32 %v3805_v44, %v182_v17  ;;  %719 = vperm.xlu0 %1773, %v3017_v38   ;;  %v217_v63 = vmul.f32 %v2623_v50, %v2471_v20  ;;  %v3033_v17 = vld [vmem:[%s3760_s2 + $0x58] sm:$0xff] }
  0xd8   :  { %v3020_v4 = vpop.eup %1925  ;;  %1935 = vtanh.f32 %v333_v36  ;;  %v3025_v14 = vadd.f32 %v3805_v44, %v183_v56  ;;  %v3028_v5 = vadd.f32 %v3805_v44, %v184_v49  ;;  %703 = vperm.xlu2 %1772, %v3033_v17   ;;  %v185_v20 = vmul.f32 %v2623_v50, %v3803_v10 }
  0xd9   :  { %v648_v27 = vpack.c.bf16 %v3020_v4, %v2976_v11  ;;  %1937 = vtanh.f32 %v2777_v30  ;;  %v408_v56 = vadd.f32 %v3802_v57, %v216_v3  ;;  %v409_v11 = vadd.f32 %v3802_v57, %v217_v63  ;;  %v3807_v57 = vld [vmem:[#allocation10_spill] sm:$0xff] }
  0xda   :  { %v1928_v36 = vpop.eup %1927  ;;  %1939 = vtanh.f32 %v406_v35  ;;  %v3044_v29 = vadd.f32 %v3805_v44, %v185_v20  ;;  %v3050_v35 = vmul.f32 %v2488_v25, %v2757_v46  ;;  %v3809_v63 = vpack.c.bf16 %v2832_v1, %v2827_v37  ;;  %v3811_v1 = vld [vmem:[#allocation8_spill] sm:$0xff] }
  0xdb   :  { %v1930_v49 = vpop.eup %1929  ;;  %1941 = vtanh.f32 %v2869_v33  ;;  %v3055_v33 = vld [vmem:[%s3759_s1] sm:$0xff] }
  0xdc   :  { %v1932_v41 = vpop.eup %1931  ;;  %v594_v42 = vpack.c.bf16 %v1930_v49, %v1918_v47  ;;  %1943 = vtanh.f32 %v407_v31  ;;  %v3059_v47 = vmul.f32 %v2555_v61, %v2757_v46 }
  0xdd   :  { %v1934_v4 = vpop.eup %1933  ;;  %v595_v30 = vpack.c.bf16 %v1932_v41, %v1920_v6  ;;  %1945 = vtanh.f32 %v2921_v22  ;;  %v3806_v6 = vld [vmem:[#allocation12_spill] sm:$0xff] }
  0xde   :  { %v1936_v10 = vpop.eup %1935  ;;  %777 = vmatpush.bf16.msra.mxu0 %v594_v42  ;;  %v596_v3 = vpack.c.bf16 %v1934_v4, %v1922_v43  ;;  %1947 = vtanh.f32 %v408_v56  ;;  %v3808_v31 = vpack.c.bf16 %v3806_v6, %v3807_v57  ;;  %v3815_v4 = vld [vmem:[#allocation13_spill] sm:$0xff]  ;;  %v2336_v6 = vmov 3  }
  0xdf   :  { %v1938_v41 = vpop.eup %1937  ;;  %826 = vmatpush.bf16.msra.mxu1 %v595_v30  ;;  %v597_v22 = vpack.c.bf16 %v1936_v10, %v1924_v18  ;;  %1949 = vtanh.f32 %v2924_v23  ;;  %v3074_v18 = vmul.f32 %v2623_v50, %v2757_v46  ;;  %v3078_v23 = vmul.f32 %v2623_v50, %v2656_v48  ;;  %1775 = vset.pattern.permute.xlu1 %v2336_v6 }
  0xe0   :  { %v1940_v42 = vpop.eup %1939  ;;  %875 = vmatpush.bf16.msra.mxu2 %v596_v3  ;;  %v649_v43 = vpack.c.bf16 %v1938_v41, %v1928_v36  ;;  %1951 = vtanh.f32 %v409_v11  ;;  %v3813_v36 = vpack.c.bf16 %v2958_v16, %v2913_v28  ;;  %715 = vperm.xlu2 %1772, %v3105_v34   ;;  %v3814_v28 = vld [vmem:[#allocation11_spill] sm:$0xff]  ;;  %v192_v16 = vmul.f32 %v2555_v61, %v3811_v1 }
  0xe1   :  { %v1942_v44 = vpop.eup %1941  ;;  %924 = vmatpush.bf16.msra.mxu3 %v597_v22  ;;  %1953 = vtanh.f32 %v2933_v52  ;;  %778 = vmatmul.bf16.vlgmr.msra.gmra.mxu0 %v3055_v33  ;;  %v190_v52 = vmul.f32 %v2485_v24, %v3811_v1  ;;  %v3119_v30 = vmul.f32 %v2623_v50, %v3815_v4  ;;  %v174_v22 = vmul.f32 %v2485_v24, %v2656_v48 }
  0xe2   :  { %966 = vmatpush.bf16.msrb.mxu0 %v3808_v31  ;;  %v1944_v32 = vpop.eup %1943  ;;  %1955 = vtanh.f32 %v2945_v7  ;;  %827 = vmatmul.bf16.vlgmr.msra.gmra.mxu1 %v3055_v33 }
  0xe3   :  { %1015 = vmatpush.bf16.msrb.mxu1 %v655_v9  ;;  %v638_v9 = vpack.c.bf16 %v1942_v44, %v1940_v42  ;;  %v1946_v37 = vpop.eup %1945  ;;  %876 = vmatmul.bf16.vlgmr.msra.gmra.mxu2 %v3055_v33  ;;  %1957 = vtanh.f32 %v2952_v21  ;;  %v191_v21 = vmul.f32 %v2488_v25, %v3811_v1  ;;  %v2295_v44 = vld [vmem:[%s3760_s2 + $0x10] sm:$0xff] }
  0xe4   :  { %1064 = vmatpush.bf16.msrb.mxu2 %v3809_v63  ;;  %v1948_v20 = vpop.eup %1947  ;;  %925 = vmatmul.bf16.vlgmr.msra.gmra.mxu3 %v3055_v33  ;;  %v639_v39 = vpack.c.bf16 %v1946_v37, %v1944_v32  ;;  %1959 = vtanh.f32 %v2955_v0  ;;  %v382_v0 = vadd.f32 %v3814_v28, %v190_v52  ;;  %v3141_v32 = vld [vmem:[%s3759_s1 + $0x8] sm:$0xff]  ;;  %v366_v37 = vadd.f32 %v2811_v58, %v174_v22 }
  0xe5   :  { %1113 = vmatpush.bf16.msrb.mxu3 %v3810_v54  ;;  %v1950_v7 = vpop.eup %1949  ;;  %1961 = vtanh.f32 %v2961_v62  ;;  %v383_v11 = vadd.f32 %v3814_v28, %v191_v21  ;;  %1777 = vset.pattern.permute.xlu0 %v2336_v6  ;;  %v2296_v52 = vld [vmem:[%s3760_s2 + $0x8] sm:$0xff]  ;;  %v360_v21 = vadd.f32 %v2771_v45, %v3059_v47  ;;  %v361_v47 = vadd.f32 %v2771_v45, %v3074_v18 }
  0xe6   :  { %967 = vmatpush.bf16.msrb.mxu0 %v3812_v59  ;;  %v1952_v56 = vpop.eup %1951  ;;  %v640_v49 = vpack.c.bf16 %v1950_v7, %v1948_v20  ;;  %1963 = vtanh.f32 %v2987_v60  ;;  %1299 = vperm.xlu0 %1777, %v2295_v44   ;;  %v359_v59 = vadd.f32 %v2771_v45, %v3050_v35 }
  0xe7   :  { %1016 = vmatpush.bf16.msrb.mxu1 %v3813_v36  ;;  %v1954_v13 = vpop.eup %1953  ;;  %1965 = vtanh.f32 %v2990_v55  ;;  %v193_v55 = vmul.f32 %v2623_v50, %v3811_v1  ;;  %v176_v1 = vmul.f32 %v2555_v61, %v2656_v48 }
  0xe8   :  { %1065 = vmatpush.bf16.msrb.mxu2 %v648_v27  ;;  %v1956_v62 = vpop.eup %1955  ;;  %v641_v27 = vpack.c.bf16 %v1954_v13, %v1952_v56  ;;  %1967 = vtanh.f32 %v2993_v2  ;;  %v166_v2 = vmul.f32 %v2485_v24, %v2757_v46  ;;  %1776 = vset.pattern.permute.xlu2 %v2336_v6  ;;  %v150_v56 = vmul.f32 %v2485_v24, %v3815_v4 }
  0xe9   :  { %1114 = vmatpush.bf16.msrb.mxu3 %v649_v43  ;;  %v1958_v60 = vpop.eup %1957  ;;  %1969 = vtanh.f32 %v2998_v53  ;;  %v384_v53 = vadd.f32 %v3814_v28, %v192_v16  ;;  %v385_v42 = vadd.f32 %v3814_v28, %v193_v55  ;;  %v175_v43 = vmul.f32 %v2488_v25, %v2656_v48  ;;  %1295 = vperm.xlu2 %1776, %v2296_v52   ;;  %v3816_v55 = vld [vmem:[#allocation15_spill] sm:$0xff] }
  0xea   :  { %968 = vmatpush.bf16.msrb.mxu0 %v638_v9  ;;  %v1960_v10 = vpop.eup %1959  ;;  %v630_v3 = vpack.c.bf16 %v1958_v60, %v1956_v62  ;;  %1971 = vtanh.f32 %v3012_v15  ;;  %v2294_v15 = vld [vmem:[%s3760_s2] sm:$0xff]  ;;  %v358_v54 = vadd.f32 %v2771_v45, %v166_v2  ;;  %v368_v35 = vadd.f32 %v2811_v58, %v176_v1  ;;  %v2297_v60 = vld [vmem:[%s3760_s2 + $0x18] sm:$0xff] }
  0xeb   :  { %1017 = vmatpush.bf16.msrb.mxu1 %v639_v39  ;;  %v1962_v41 = vpop.eup %1961  ;;  %1973 = vtanh.f32 %v382_v0  ;;  %1291 = vperm.xlu1 %1775, %v2294_v15   ;;  %v367_v7 = vadd.f32 %v2811_v58, %v175_v43  ;;  %v151_v0 = vmul.f32 %v2488_v25, %v3815_v4  ;;  %v369_v62 = vadd.f32 %v2811_v58, %v3078_v23  ;;  %v2298_v45 = vld [vmem:[%s3760_s2 + $0x38] sm:$0xff] }
  0xec   :  { %1066 = vmatpush.bf16.msrb.mxu2 %v640_v49  ;;  %v1964_v57 = vpop.eup %1963  ;;  %v631_v31 = vpack.c.bf16 %v1962_v41, %v1960_v10  ;;  %1975 = vtanh.f32 %v3025_v14  ;;  %v158_v49 = vmul.f32 %v2485_v24, %v2839_v12  ;;  %v342_v10 = vadd.f32 %v3816_v55, %v150_v56  ;;  %v2299_v41 = vld [vmem:[%s3760_s2 + $0x20] sm:$0xff] }
  0xed   :  { %1115 = vmatpush.bf16.msrb.mxu3 %v641_v27  ;;  %v1966_v46 = vpop.eup %1965  ;;  %1977 = vtanh.f32 %v383_v11  ;;  %v159_v27 = vmul.f32 %v2488_v25, %v2839_v12  ;;  %v152_v58 = vmul.f32 %v2555_v61, %v3815_v4  ;;  %v160_v2 = vmul.f32 %v2555_v61, %v2839_v12 }
  0xee   :  { %969 = vmatpush.bf16.msrb.mxu0 %v630_v3  ;;  %v1968_v63 = vpop.eup %1967  ;;  %v632_v14 = vpack.c.bf16 %v1966_v46, %v1964_v57  ;;  %1979 = vtanh.f32 %v3028_v5  ;;  %1319 = vperm.xlu0 %1777, %v2298_v45   ;;  %v350_v3 = vadd.f32 %v2837_v8, %v158_v49  ;;  %v343_v6 = vadd.f32 %v3816_v55, %v151_v0 }
  0xef   :  { %1018 = vmatpush.bf16.msrb.mxu1 %v631_v31  ;;  %v1970_v9 = vpop.eup %1969  ;;  %1981 = vtanh.f32 %v384_v53  ;;  %v351_v4 = vadd.f32 %v2837_v8, %v159_v27  ;;  %v161_v31 = vmul.f32 %v2623_v50, %v2839_v12  ;;  %v134_v43 = vmul.f32 %v2485_v24, %v2897_v51 }
  0xf0   :  { %v1972_v5 = vpop.eup %1971  ;;  %1067 = vmatpush.bf16.msrb.mxu2 %v632_v14  ;;  %v633_v20 = vpack.c.bf16 %v1970_v9, %v1968_v63  ;;  %1983 = vtanh.f32 %v3044_v29  ;;  %v352_v63 = vadd.f32 %v2837_v8, %v160_v2  ;;  %v142_v14 = vmul.f32 %v2485_v24, %v2855_v19  ;;  %v2300_v24 = vld [vmem:[%s3760_s2 + $0x28] sm:$0xff] }
  0xf1   :  { %v1974_v39 = vpop.eup %1973  ;;  %1985 = vtanh.f32 %v385_v42  ;;  %783 = vmatmul.bf16.gmra.mxu0 %v3141_v32  ;;  %1307 = vperm.xlu2 %1776, %v2299_v41   ;;  %v344_v42 = vadd.f32 %v3816_v55, %v152_v58  ;;  %v345_v12 = vadd.f32 %v3816_v55, %v3119_v30  ;;  %v353_v52 = vadd.f32 %v2837_v8, %v161_v31 }
  0xf2   :  { %v1976_v36 = vpop.eup %1975  ;;  %1116 = vmatpush.bf16.msrb.mxu3 %v633_v20  ;;  %v622_v48 = vpack.c.bf16 %v1974_v39, %v1972_v5  ;;  %1987 = vtanh.f32 %v358_v54  ;;  %832 = vmatmul.bf16.gmra.mxu1 %v3141_v32  ;;  %v143_v5 = vmul.f32 %v2488_v25, %v2855_v19  ;;  %v2301_v20 = vld [vmem:[%s3760_s2 + $0x50] sm:$0xff]  ;;  %v326_v39 = vadd.f32 %v2915_v40, %v134_v43 }
  0xf3   :  { %v1978_v29 = vpop.eup %1977  ;;  %881 = vmatmul.bf16.gmra.mxu2 %v3141_v32  ;;  %1989 = vtanh.f32 %v366_v37  ;;  %1303 = vperm.xlu1 %1775, %v2297_v60   ;;  %v135_v37 = vmul.f32 %v2488_v25, %v2897_v51  ;;  %v136_v8 = vmul.f32 %v2555_v61, %v2897_v51  ;;  %v3217_v25 = vld [vmem:[%s3759_s1 + $0x10] sm:$0xff]  ;;  %v137_v49 = vmul.f32 %v2623_v50, %v2897_v51 }
  0xf4   :  { %v1980_v13 = vpop.eup %1979  ;;  %970 = vmatpush.bf16.msrb.mxu0 %v622_v48  ;;  %v623_v28 = vpack.c.bf16 %v1978_v29, %v1976_v36  ;;  %930 = vmatmul.bf16.gmra.mxu3 %v3141_v32  ;;  %1991 = vtanh.f32 %v359_v59  ;;  %v334_v36 = vadd.f32 %v2967_v26, %v142_v14  ;;  %v144_v48 = vmul.f32 %v2555_v61, %v2855_v19  ;;  %v3290_v14 = vld [vmem:[%s3759_s1 + $0x30] sm:$0xff] }
  0xf5   :  { %v1982_v16 = vpop.eup %1981  ;;  %1993 = vtanh.f32 %v367_v7  ;;  %v145_v61 = vmul.f32 %v2623_v50, %v2855_v19  ;;  %v329_v50 = vadd.f32 %v2915_v40, %v137_v49 }
  0xf6   :  { %v1984_v18 = vpop.eup %1983  ;;  %1019 = vmatpush.bf16.msrb.mxu1 %v623_v28  ;;  %v624_v11 = vpack.c.bf16 %v1982_v16, %v1980_v13  ;;  %1995 = vtanh.f32 %v360_v21  ;;  %1331 = vperm.xlu0 %1777, %v2301_v20   ;;  %v2302_v21 = vld [vmem:[%s3760_s2 + $0x30] sm:$0xff]  ;;  %v335_v28 = vadd.f32 %v2967_v26, %v143_v5  ;;  %v328_v16 = vadd.f32 %v2915_v40, %v136_v8 }
  0xf7   :  { %v1986_v23 = vpop.eup %1985  ;;  %1997 = vtanh.f32 %v368_v35  ;;  %v327_v35 = vadd.f32 %v2915_v40, %v135_v37  ;;  %v336_v27 = vadd.f32 %v2967_v26, %v144_v48  ;;  %v337_v45 = vadd.f32 %v2967_v26, %v145_v61  ;;  %v2305_v26 = vld [vmem:[%s3760_s2 + $0x48] sm:$0xff]  ;;  %v3305_v37 = vld [vmem:[%s3759_s1 + $0x38] sm:$0xff] }
  0xf8   :  { %v1988_v53 = vpop.eup %1987  ;;  %1068 = vmatpush.bf16.msrb.mxu2 %v624_v11  ;;  %v625_v22 = vpack.c.bf16 %v1986_v23, %v1984_v18  ;;  %1999 = vtanh.f32 %v361_v47  ;;  %v2303_v18 = vld [vmem:[%s3760_s2 + $0x40] sm:$0xff]  ;;  %v2304_v11 = vld [vmem:[%s3760_s2 + $0x68] sm:$0xff] }
  0xf9   :  { %v1990_v57 = vpop.eup %1989  ;;  %2001 = vtanh.f32 %v369_v62  ;;  %1315 = vperm.xlu2 %1776, %v2302_v21   ;;  %v2337_v21 = vmov 4  }
  0xfa   :  { %v1992_v15 = vpop.eup %1991  ;;  %1117 = vmatpush.bf16.msrb.mxu3 %v625_v22  ;;  %v614_v46 = vpack.c.bf16 %v1990_v57, %v1988_v53  ;;  %2003 = vtanh.f32 %v342_v10 }
  0xfb   :  { %v1994_v44 = vpop.eup %1993  ;;  %2005 = vtanh.f32 %v350_v3  ;;  %1311 = vperm.xlu1 %1775, %v2300_v24  }
  0xfc   :  { %v1996_v54 = vpop.eup %1995  ;;  %971 = vmatpush.bf16.msrb.mxu0 %v614_v46  ;;  %v615_v9 = vpack.c.bf16 %v1994_v44, %v1992_v15  ;;  %2007 = vtanh.f32 %v343_v6  ;;  %v3252_v15 = vld [vmem:[%s3759_s1 + $0x18] sm:$0xff]  ;;  %v3275_v44 = vld [vmem:[%s3759_s1 + $0x28] sm:$0xff] }
  0xfd   :  { %v1998_v1 = vpop.eup %1997  ;;  %2009 = vtanh.f32 %v351_v4 }
  0xfe   :  { %v2000_v30 = vpop.eup %1999  ;;  %1020 = vmatpush.bf16.msrb.mxu1 %v615_v9  ;;  %v616_v59 = vpack.c.bf16 %v1998_v1, %v1996_v54  ;;  %2011 = vtanh.f32 %v344_v42  ;;  %1343 = vperm.xlu0 %1777, %v2304_v11   ;;  %v2306_v42 = vld [vmem:[%s3760_s2 + $0x60] sm:$0xff] }
  0xff   :  { %v2002_v7 = vpop.eup %2001  ;;  %2013 = vtanh.f32 %v352_v63 }
 0x100   :  { %v2004_v56 = vpop.eup %2003  ;;  %1069 = vmatpush.bf16.msrb.mxu2 %v616_v59  ;;  %v617_v29 = vpack.c.bf16 %v2002_v7, %v2000_v30  ;;  %2015 = vtanh.f32 %v345_v12 }
 0x101   :  { %v2006_v13 = vpop.eup %2005  ;;  %2017 = vtanh.f32 %v353_v52  ;;  %788 = vmatmul.bf16.gmra.mxu0 %v3217_v25  ;;  %1327 = vperm.xlu2 %1776, %v2305_v26  }
 0x102   :  { %v2008_v47 = vpop.eup %2007  ;;  %1118 = vmatpush.bf16.msrb.mxu3 %v617_v29  ;;  %v606_v0 = vpack.c.bf16 %v2006_v13, %v2004_v56  ;;  %2019 = vtanh.f32 %v326_v39  ;;  %837 = vmatmul.bf16.gmra.mxu1 %v3217_v25 }
 0x103   :  { %v2010_v62 = vpop.eup %2009  ;;  %2021 = vtanh.f32 %v334_v36  ;;  %886 = vmatmul.bf16.gmra.mxu2 %v3217_v25  ;;  %1323 = vperm.xlu1 %1775, %v2303_v18   ;;  %v32_v36 = vld [vmem:[%s3760_s2] sm:$0x1]  ;;  %s2338_s2 = smov [#allocation2]  }
 0x104   :  { %v2012_v51 = vpop.eup %2011  ;;  %972 = vmatpush.bf16.msrb.mxu0 %v606_v0  ;;  %v607_v60 = vpack.c.bf16 %v2010_v62, %v2008_v47  ;;  %2023 = vtanh.f32 %v327_v35  ;;  %935 = vmatmul.bf16.gmra.mxu3 %v3217_v25  ;;  %s1699_s12 = sshll.u32 %s2338_s2, 4  ;;  %s1700_s12 = int_to_ptr.vmem [resolvable:$true] %s1699_s12 }
 0x105   :  { %v2014_v19 = vpop.eup %2013  ;;  %2025 = vtanh.f32 %v335_v28 }
 0x106   :  { %v2016_v55 = vpop.eup %2015  ;;  %1021 = vmatpush.bf16.msrb.mxu1 %v607_v60  ;;  %v608_v10 = vpack.c.bf16 %v2014_v19, %v2012_v51  ;;  %2027 = vtanh.f32 %v328_v16  ;;  %1778 = vset.pattern.permute.xlu0 %v2337_v21 }
 0x107   :  { %v2018_v40 = vpop.eup %2017  ;;  %2029 = vtanh.f32 %v336_v27  ;;  %1652 = vperm.xlu0 %1778, %v32_v36  }
 0x108   :  { %v2020_v58 = vpop.eup %2019  ;;  %1070 = vmatpush.bf16.msrb.mxu2 %v608_v10  ;;  %v609_v23 = vpack.c.bf16 %v2018_v40, %v2016_v55  ;;  %2031 = vtanh.f32 %v329_v50 }
 0x109   :  { %v2022_v3 = vpop.eup %2021  ;;  %2033 = vtanh.f32 %v337_v45  ;;  %1339 = vperm.xlu2 %1776, %v2306_v42  }
 0x10a   :  { %v2024_v2 = vpop.eup %2023  ;;  %1119 = vmatpush.bf16.msrb.mxu3 %v609_v23  ;;  %v598_v41 = vpack.c.bf16 %v2022_v3, %v2020_v58 }
 0x10b   :  { %v2026_v53 = vpop.eup %2025  ;;  %1335 = vperm.xlu1 %1775, %v3033_v17   ;;  %v3266_v17 = vld [vmem:[%s3759_s1 + $0x20] sm:$0xff] }
 0x10c   :  { %v2028_v22 = vpop.eup %2027  ;;  %973 = vmatpush.bf16.msrb.mxu0 %v598_v41  ;;  %v599_v6 = vpack.c.bf16 %v2026_v53, %v2024_v2 }
 0x10d   :  { %v2030_v57 = vpop.eup %2029 }
 0x10e   :  { %v2032_v4 = vpop.eup %2031  ;;  %1022 = vmatpush.bf16.msrb.mxu1 %v599_v6  ;;  %v600_v31 = vpack.c.bf16 %v2030_v57, %v2028_v22 }
 0x10f   :  { %v2034_v46 = vpop.eup %2033 }
 0x110   :  { %1071 = vmatpush.bf16.msrb.mxu2 %v600_v31  ;;  %v601_v43 = vpack.c.bf16 %v2034_v46, %v2032_v4 }
 0x111   :  { %793 = vmatmul.bf16.gmra.mxu0 %v3252_v15  ;;  %1351 = vperm.xlu2 %1776, %v3017_v38  }
 0x112   :  { %1120 = vmatpush.bf16.msrb.mxu3 %v601_v43  ;;  %842 = vmatmul.bf16.gmra.mxu1 %v3252_v15 }
 0x113   :  { %891 = vmatmul.bf16.gmra.mxu2 %v3252_v15  ;;  %1347 = vperm.xlu1 %1775, %v3105_v34   ;;  %v3277_v34 = vpop.permute.xlu2 %659 }
 0x114   :  { %940 = vmatmul.bf16.gmra.mxu3 %v3252_v15 }
 0x11b   :  { %v3283_v38 = vpop.permute.xlu2 %671 }
 0x121   :  { %798 = vmatmul.bf16.gmra.mxu0 %v3266_v17 }
 0x122   :  { %847 = vmatmul.bf16.gmra.mxu1 %v3266_v17 }
 0x123   :  { %896 = vmatmul.bf16.gmra.mxu2 %v3266_v17  ;;  %v3298_v9 = vpop.permute.xlu2 %679 }
 0x124   :  { %945 = vmatmul.bf16.gmra.mxu3 %v3266_v17 }
 0x127   :  { %v3285_v63 = vpop.permute.xlu1 %667 }
 0x129   :  { %v3296_v54 = vpop.permute.xlu0 %663 }
 0x12b   :  { %v3309_v52 = vpop.permute.xlu2 %691 }
 0x12f   :  { %v3300_v12 = vpop.permute.xlu1 %675 }
 0x131   :  { %803 = vmatmul.bf16.gmra.mxu0 %v3275_v44  ;;  %v3307_v1 = vpop.permute.xlu0 %683 }
 0x132   :  { %852 = vmatmul.bf16.gmra.mxu1 %v3275_v44 }
 0x133   :  { %901 = vmatmul.bf16.gmra.mxu2 %v3275_v44  ;;  %v3319_v20 = vpop.permute.xlu2 %703 }
 0x134   :  { %950 = vmatmul.bf16.gmra.mxu3 %v3275_v44 }
 0x137   :  { %v3311_v5 = vpop.permute.xlu1 %687 }
 0x139   :  { %v3317_v24 = vpop.permute.xlu0 %695 }
 0x13b   :  { %v3328_v7 = vpop.permute.xlu2 %715 }
 0x13f   :  { %v3321_v30 = vpop.permute.xlu1 %699 }
 0x141   :  { %808 = vmatmul.bf16.gmra.mxu0 %v3290_v14  ;;  %v3324_v8 = vpop.permute.xlu0 %707 }
 0x142   :  { %857 = vmatmul.bf16.gmra.mxu1 %v3290_v14 }
 0x143   :  { %906 = vmatmul.bf16.gmra.mxu2 %v3290_v14  ;;  %v3344_v62 = vpop.permute.xlu2 %1295 }
 0x144   :  { %955 = vmatmul.bf16.gmra.mxu3 %v3290_v14 }
 0x147   :  { %v3334_v48 = vpop.permute.xlu1 %711 }
 0x149   :  { %v3342_v16 = vpop.permute.xlu0 %719 }
 0x151   :  { %813 = vmatmul.bf16.gmra.mxu0 %v3305_v37 }
 0x152   :  { %862 = vmatmul.bf16.gmra.mxu1 %v3305_v37 }
 0x153   :  { %911 = vmatmul.bf16.gmra.mxu2 %v3305_v37 }
 0x154   :  { %960 = vmatmul.bf16.gmra.mxu3 %v3305_v37 }
 0x158   :  { %v3360_v31 = vpop.permute.xlu0 %1299 }
 0x15d   :  { %v3346_v51 = vpop.permute.xlu1 %1291 }
 0x15e   :  { %v779_v59 = vpop.f32.mrf.mxu0 }
 0x15f   :  { %v828_v39 = vpop.f32.mrf.mxu1  ;;  %v780_v56 = vadd.f32 %v779_v59, %v3277_v34 }
 0x160   :  { %v829_v29 = vadd.f32 %v828_v39, %v3277_v34 }
 0x161   :  { %974 = vmatmul.bf16.vlgmr.msrb.gmra.mxu0 %v3055_v33  ;;  %2035 = vtanh.f32 %v780_v56 }
 0x162   :  { %1023 = vmatmul.bf16.vlgmr.msrb.gmra.mxu1 %v3055_v33  ;;  %2037 = vtanh.f32 %v829_v29 }
 0x163   :  { %1072 = vmatmul.bf16.vlgmr.msrb.gmra.mxu2 %v3055_v33 }
 0x164   :  { %1121 = vmatmul.bf16.vlgmr.msrb.gmra.mxu3 %v3055_v33 }
 0x166   :  { %v877_v35 = vpop.f32.mrf.mxu2  ;;  %v781_v13 = vpop.f32.mrf.mxu0 }
 0x167   :  { %v926_v49 = vpop.f32.mrf.mxu3  ;;  %v782_v28 = vadd.f32 %v781_v13, %v3296_v54  ;;  %v830_v61 = vpop.f32.mrf.mxu1  ;;  %v878_v33 = vadd.f32 %v877_v35, %v3277_v34 }
 0x168   :  { %v831_v47 = vadd.f32 %v830_v61, %v3296_v54  ;;  %v927_v0 = vadd.f32 %v926_v49, %v3277_v34  ;;  %v2036_v60 = vpop.eup %2035 }
 0x169   :  { %2039 = vtanh.f32 %v782_v28  ;;  %v2038_v18 = vpop.eup %2037  ;;  %v1354_v23 = vmul.f32 %v2036_v60, %v3346_v51 }
 0x16a   :  { %2041 = vtanh.f32 %v831_v47  ;;  %v1355_v2 = vmul.f32 %v2038_v18, %v3346_v51 }
 0x16b   :  { %2043 = vtanh.f32 %v878_v33 }
 0x16c   :  { %2045 = vtanh.f32 %v927_v0 }
 0x16e   :  { %v879_v27 = vpop.f32.mrf.mxu2  ;;  %v784_v45 = vpop.f32.mrf.mxu0 }
 0x16f   :  { %v880_v50 = vadd.f32 %v879_v27, %v3296_v54  ;;  %v928_v19 = vpop.f32.mrf.mxu3  ;;  %v785_v55 = vadd.f32 %v784_v45, %v3285_v63  ;;  %v833_v10 = vpop.f32.mrf.mxu1 }
 0x170   :  { %v929_v11 = vadd.f32 %v928_v19, %v3296_v54  ;;  %v2040_v40 = vpop.eup %2039  ;;  %v834_v26 = vadd.f32 %v833_v10, %v3285_v63  ;;  %v3372_v45 = vpop.permute.xlu1 %1303 }
 0x171   :  { %2047 = vtanh.f32 %v880_v50  ;;  %v2042_v58 = vpop.eup %2041  ;;  %v1362_v3 = vmul.f32 %v2040_v40, %v3344_v62  ;;  %979 = vmatmul.bf16.gmra.mxu0 %v3141_v32 }
 0x172   :  { %2049 = vtanh.f32 %v929_v11  ;;  %v1363_v41 = vmul.f32 %v2042_v58, %v3344_v62  ;;  %1028 = vmatmul.bf16.gmra.mxu1 %v3141_v32  ;;  %v2044_v22 = vpop.eup %2043 }
 0x173   :  { %2051 = vtanh.f32 %v785_v55  ;;  %1077 = vmatmul.bf16.gmra.mxu2 %v3141_v32  ;;  %v1482_v53 = vadd.f32 %v1362_v3, %v1354_v23  ;;  %v2046_v57 = vpop.eup %2045  ;;  %v1356_v36 = vmul.f32 %v2044_v22, %v3346_v51 }
 0x174   :  { %2053 = vtanh.f32 %v834_v26  ;;  %1126 = vmatmul.bf16.gmra.mxu3 %v3141_v32  ;;  %v1503_v6 = vadd.f32 %v1363_v41, %v1355_v2  ;;  %v1357_v49 = vmul.f32 %v2046_v57, %v3346_v51 }
 0x176   :  { %v882_v4 = vpop.f32.mrf.mxu2  ;;  %v786_v59 = vpop.f32.mrf.mxu0 }
 0x177   :  { %v2048_v46 = vpop.eup %2047  ;;  %v883_v42 = vadd.f32 %v882_v4, %v3285_v63  ;;  %v931_v43 = vpop.f32.mrf.mxu3  ;;  %v787_v32 = vadd.f32 %v786_v59, %v3283_v38 }
 0x178   :  { %v2050_v39 = vpop.eup %2049  ;;  %v1364_v21 = vmul.f32 %v2048_v46, %v3344_v62  ;;  %v932_v56 = vadd.f32 %v931_v43, %v3285_v63  ;;  %v835_v29 = vpop.f32.mrf.mxu1 }
 0x179   :  { %v2052_v35 = vpop.eup %2051  ;;  %v1365_v13 = vmul.f32 %v2050_v39, %v3344_v62  ;;  %2055 = vtanh.f32 %v883_v42  ;;  %v836_v28 = vadd.f32 %v835_v29, %v3283_v38  ;;  %v3386_v39 = vpop.permute.xlu2 %1307 }
 0x17a   :  { %v2054_v61 = vpop.eup %2053  ;;  %v1524_v47 = vadd.f32 %v1364_v21, %v1356_v36  ;;  %2057 = vtanh.f32 %v932_v56  ;;  %v1370_v33 = vmul.f32 %v2052_v35, %v3360_v31 }
 0x17b   :  { %v1545_v0 = vadd.f32 %v1365_v13, %v1357_v49  ;;  %2059 = vtanh.f32 %v787_v32  ;;  %v1371_v27 = vmul.f32 %v2054_v61, %v3360_v31 }
 0x17c   :  { %2061 = vtanh.f32 %v836_v28  ;;  %v1483_v60 = vadd.f32 %v1482_v53, %v1370_v33 }
 0x17d   :  { %v1504_v50 = vadd.f32 %v1503_v6, %v1371_v27 }
 0x17e   :  { %v884_v19 = vpop.f32.mrf.mxu2  ;;  %v789_v10 = vpop.f32.mrf.mxu0 }
 0x17f   :  { %v2056_v18 = vpop.eup %2055  ;;  %v885_v11 = vadd.f32 %v884_v19, %v3283_v38  ;;  %v933_v55 = vpop.f32.mrf.mxu3  ;;  %v790_v23 = vadd.f32 %v789_v10, %v3300_v12 }
 0x180   :  { %v2058_v40 = vpop.eup %2057  ;;  %v1372_v26 = vmul.f32 %v2056_v18, %v3360_v31  ;;  %v934_v58 = vadd.f32 %v933_v55, %v3283_v38  ;;  %v838_v3 = vpop.f32.mrf.mxu1 }
 0x181   :  { %v2060_v2 = vpop.eup %2059  ;;  %v1373_v41 = vmul.f32 %v2058_v40, %v3360_v31  ;;  %2063 = vtanh.f32 %v885_v11  ;;  %v839_v53 = vadd.f32 %v838_v3, %v3300_v12  ;;  %984 = vmatmul.bf16.gmra.mxu0 %v3217_v25  ;;  %v3396_v55 = vpop.permute.xlu1 %1311 }
 0x182   :  { %v2062_v22 = vpop.eup %2061  ;;  %v1525_v6 = vadd.f32 %v1524_v47, %v1372_v26  ;;  %2065 = vtanh.f32 %v934_v58  ;;  %v1378_v57 = vmul.f32 %v2060_v2, %v3372_v45  ;;  %1033 = vmatmul.bf16.gmra.mxu1 %v3217_v25 }
 0x183   :  { %v1546_v4 = vadd.f32 %v1545_v0, %v1373_v41  ;;  %2067 = vtanh.f32 %v790_v23  ;;  %v1379_v46 = vmul.f32 %v2062_v22, %v3372_v45  ;;  %1082 = vmatmul.bf16.gmra.mxu2 %v3217_v25 }
 0x184   :  { %2069 = vtanh.f32 %v839_v53  ;;  %v1484_v42 = vadd.f32 %v1483_v60, %v1378_v57  ;;  %1131 = vmatmul.bf16.gmra.mxu3 %v3217_v25 }
 0x185   :  { %v1505_v43 = vadd.f32 %v1504_v50, %v1379_v46 }
 0x186   :  { %v887_v59 = vpop.f32.mrf.mxu2  ;;  %v791_v32 = vpop.f32.mrf.mxu0 }
 0x187   :  { %v2064_v36 = vpop.eup %2063  ;;  %v888_v21 = vadd.f32 %v887_v59, %v3300_v12  ;;  %v936_v56 = vpop.f32.mrf.mxu3  ;;  %v792_v13 = vadd.f32 %v791_v32, %v3298_v9 }
 0x188   :  { %v2066_v29 = vpop.eup %2065  ;;  %v1380_v35 = vmul.f32 %v2064_v36, %v3372_v45  ;;  %v937_v49 = vadd.f32 %v936_v56, %v3300_v12  ;;  %v840_v28 = vpop.f32.mrf.mxu1 }
 0x189   :  { %v2068_v61 = vpop.eup %2067  ;;  %v1381_v25 = vmul.f32 %v2066_v29, %v3372_v45  ;;  %2071 = vtanh.f32 %v888_v21  ;;  %v841_v47 = vadd.f32 %v840_v28, %v3298_v9  ;;  %v3410_v32 = vpop.permute.xlu2 %1315 }
 0x18a   :  { %v2070_v33 = vpop.eup %2069  ;;  %v1526_v0 = vadd.f32 %v1525_v6, %v1380_v35  ;;  %2073 = vtanh.f32 %v937_v49  ;;  %v1386_v27 = vmul.f32 %v2068_v61, %v3386_v39 }
 0x18b   :  { %v1547_v60 = vadd.f32 %v1546_v4, %v1381_v25  ;;  %2075 = vtanh.f32 %v792_v13  ;;  %v1387_v50 = vmul.f32 %v2070_v33, %v3386_v39 }
 0x18c   :  { %2077 = vtanh.f32 %v841_v47  ;;  %v1485_v19 = vadd.f32 %v1484_v42, %v1386_v27 }
 0x18d   :  { %v1506_v18 = vadd.f32 %v1505_v43, %v1387_v50 }
 0x18e   :  { %v889_v11 = vpop.f32.mrf.mxu2  ;;  %v794_v58 = vpop.f32.mrf.mxu0 }
 0x18f   :  { %v2072_v10 = vpop.eup %2071  ;;  %v890_v40 = vadd.f32 %v889_v11, %v3298_v9  ;;  %v938_v26 = vpop.f32.mrf.mxu3  ;;  %v795_v41 = vadd.f32 %v794_v58, %v3307_v1 }
 0x190   :  { %v2074_v23 = vpop.eup %2073  ;;  %v1388_v3 = vmul.f32 %v2072_v10, %v3386_v39  ;;  %v939_v2 = vadd.f32 %v938_v26, %v3298_v9  ;;  %v843_v53 = vpop.f32.mrf.mxu1 }
 0x191   :  { %v2076_v22 = vpop.eup %2075  ;;  %v1389_v6 = vmul.f32 %v2074_v23, %v3386_v39  ;;  %2079 = vtanh.f32 %v890_v40  ;;  %v844_v57 = vadd.f32 %v843_v53, %v3307_v1  ;;  %989 = vmatmul.bf16.gmra.mxu0 %v3252_v15  ;;  %v3420_v58 = vpop.permute.xlu0 %1319 }
 0x192   :  { %v2078_v4 = vpop.eup %2077  ;;  %v1527_v46 = vadd.f32 %v1526_v0, %v1388_v3  ;;  %2081 = vtanh.f32 %v939_v2  ;;  %v1394_v42 = vmul.f32 %v2076_v22, %v3396_v55  ;;  %1038 = vmatmul.bf16.gmra.mxu1 %v3252_v15 }
 0x193   :  { %v1548_v43 = vadd.f32 %v1547_v60, %v1389_v6  ;;  %2083 = vtanh.f32 %v795_v41  ;;  %v1395_v59 = vmul.f32 %v2078_v4, %v3396_v55  ;;  %1087 = vmatmul.bf16.gmra.mxu2 %v3252_v15 }
 0x194   :  { %2085 = vtanh.f32 %v844_v57  ;;  %v1486_v36 = vadd.f32 %v1485_v19, %v1394_v42  ;;  %1136 = vmatmul.bf16.gmra.mxu3 %v3252_v15 }
 0x195   :  { %v1507_v21 = vadd.f32 %v1506_v18, %v1395_v59 }
 0x196   :  { %v892_v56 = vpop.f32.mrf.mxu2  ;;  %v796_v13 = vpop.f32.mrf.mxu0 }
 0x197   :  { %v2080_v29 = vpop.eup %2079  ;;  %v893_v35 = vadd.f32 %v892_v56, %v3307_v1  ;;  %v941_v49 = vpop.f32.mrf.mxu3  ;;  %v797_v47 = vadd.f32 %v796_v13, %v3311_v5 }
 0x198   :  { %v2082_v28 = vpop.eup %2081  ;;  %v1396_v61 = vmul.f32 %v2080_v29, %v3396_v55  ;;  %v942_v25 = vadd.f32 %v941_v49, %v3307_v1  ;;  %v845_v33 = vpop.f32.mrf.mxu1 }
 0x199   :  { %v2084_v0 = vpop.eup %2083  ;;  %v1397_v15 = vmul.f32 %v2082_v28, %v3396_v55  ;;  %2087 = vtanh.f32 %v893_v35  ;;  %v846_v27 = vadd.f32 %v845_v33, %v3311_v5  ;;  %v3434_v28 = vpop.permute.xlu1 %1323 }
 0x19a   :  { %v2086_v60 = vpop.eup %2085  ;;  %v1528_v50 = vadd.f32 %v1527_v46, %v1396_v61  ;;  %2089 = vtanh.f32 %v942_v25  ;;  %v1402_v19 = vmul.f32 %v2084_v0, %v3410_v32 }
 0x19b   :  { %v1549_v18 = vadd.f32 %v1548_v43, %v1397_v15  ;;  %2091 = vtanh.f32 %v797_v47  ;;  %v1403_v11 = vmul.f32 %v2086_v60, %v3410_v32 }
 0x19c   :  { %2093 = vtanh.f32 %v846_v27  ;;  %v1487_v10 = vadd.f32 %v1486_v36, %v1402_v19 }
 0x19d   :  { %v1508_v40 = vadd.f32 %v1507_v21, %v1403_v11 }
 0x19e   :  { %v894_v26 = vpop.f32.mrf.mxu2  ;;  %v799_v41 = vpop.f32.mrf.mxu0 }
 0x19f   :  { %v2088_v23 = vpop.eup %2087  ;;  %v895_v3 = vadd.f32 %v894_v26, %v3311_v5  ;;  %v943_v2 = vpop.f32.mrf.mxu3  ;;  %v800_v57 = vadd.f32 %v799_v41, %v3309_v52 }
 0x1a0   :  { %v2090_v53 = vpop.eup %2089  ;;  %v1404_v22 = vmul.f32 %v2088_v23, %v3410_v32  ;;  %v944_v6 = vadd.f32 %v943_v2, %v3311_v5  ;;  %v848_v4 = vpop.f32.mrf.mxu1 }
 0x1a1   :  { %v2092_v46 = vpop.eup %2091  ;;  %v1405_v42 = vmul.f32 %v2090_v53, %v3410_v32  ;;  %2095 = vtanh.f32 %v895_v3  ;;  %v849_v43 = vadd.f32 %v848_v4, %v3309_v52  ;;  %994 = vmatmul.bf16.gmra.mxu0 %v3266_v17  ;;  %v3444_v53 = vpop.permute.xlu2 %1327 }
 0x1a2   :  { %v2094_v59 = vpop.eup %2093  ;;  %v1529_v36 = vadd.f32 %v1528_v50, %v1404_v22  ;;  %2097 = vtanh.f32 %v944_v6  ;;  %v1410_v21 = vmul.f32 %v2092_v46, %v3420_v58  ;;  %1043 = vmatmul.bf16.gmra.mxu1 %v3266_v17 }
 0x1a3   :  { %v1550_v56 = vadd.f32 %v1549_v18, %v1405_v42  ;;  %2099 = vtanh.f32 %v800_v57  ;;  %v1411_v29 = vmul.f32 %v2094_v59, %v3420_v58  ;;  %1092 = vmatmul.bf16.gmra.mxu2 %v3266_v17 }
 0x1a4   :  { %2101 = vtanh.f32 %v849_v43  ;;  %v1488_v35 = vadd.f32 %v1487_v10, %v1410_v21  ;;  %1141 = vmatmul.bf16.gmra.mxu3 %v3266_v17 }
 0x1a5   :  { %v1509_v49 = vadd.f32 %v1508_v40, %v1411_v29 }
 0x1a6   :  { %v897_v13 = vpop.f32.mrf.mxu2  ;;  %v801_v33 = vpop.f32.mrf.mxu0 }
 0x1a7   :  { %v2096_v61 = vpop.eup %2095  ;;  %v898_v25 = vadd.f32 %v897_v13, %v3309_v52  ;;  %v946_v47 = vpop.f32.mrf.mxu3  ;;  %v802_v60 = vadd.f32 %v801_v33, %v3317_v24 }
 0x1a8   :  { %v2098_v0 = vpop.eup %2097  ;;  %v1412_v15 = vmul.f32 %v2096_v61, %v3420_v58  ;;  %v947_v27 = vadd.f32 %v946_v47, %v3309_v52  ;;  %v850_v50 = vpop.f32.mrf.mxu1 }
 0x1a9   :  { %v2100_v19 = vpop.eup %2099  ;;  %v1413_v17 = vmul.f32 %v2098_v0, %v3420_v58  ;;  %2103 = vtanh.f32 %v898_v25  ;;  %v851_v18 = vadd.f32 %v850_v50, %v3317_v24 }
 0x1aa   :  { %v2102_v11 = vpop.eup %2101  ;;  %v1530_v10 = vadd.f32 %v1529_v36, %v1412_v15  ;;  %2105 = vtanh.f32 %v947_v27  ;;  %v1418_v40 = vmul.f32 %v2100_v19, %v3434_v28  ;;  %v3458_v15 = vpop.permute.xlu0 %1331 }
 0x1ab   :  { %v1551_v26 = vadd.f32 %v1550_v56, %v1413_v17  ;;  %2107 = vtanh.f32 %v802_v60  ;;  %v1419_v23 = vmul.f32 %v2102_v11, %v3434_v28 }
 0x1ac   :  { %2109 = vtanh.f32 %v851_v18  ;;  %v1489_v3 = vadd.f32 %v1488_v35, %v1418_v40 }
 0x1ad   :  { %v1510_v2 = vadd.f32 %v1509_v49, %v1419_v23 }
 0x1ae   :  { %v899_v41 = vpop.f32.mrf.mxu2  ;;  %v804_v4 = vpop.f32.mrf.mxu0 }
 0x1af   :  { %v2104_v22 = vpop.eup %2103  ;;  %v900_v6 = vadd.f32 %v899_v41, %v3317_v24  ;;  %v948_v57 = vpop.f32.mrf.mxu3  ;;  %v805_v59 = vadd.f32 %v804_v4, %v3321_v30 }
 0x1b0   :  { %v2106_v46 = vpop.eup %2105  ;;  %v1420_v42 = vmul.f32 %v2104_v22, %v3434_v28  ;;  %v949_v43 = vadd.f32 %v948_v57, %v3317_v24  ;;  %v853_v36 = vpop.f32.mrf.mxu1 }
 0x1b1   :  { %v2108_v21 = vpop.eup %2107  ;;  %v1421_v56 = vmul.f32 %v2106_v46, %v3434_v28  ;;  %2111 = vtanh.f32 %v900_v6  ;;  %v854_v29 = vadd.f32 %v853_v36, %v3321_v30  ;;  %999 = vmatmul.bf16.gmra.mxu0 %v3275_v44 }
 0x1b2   :  { %v2110_v35 = vpop.eup %2109  ;;  %v1531_v49 = vadd.f32 %v1530_v10, %v1420_v42  ;;  %2113 = vtanh.f32 %v949_v43  ;;  %v1426_v13 = vmul.f32 %v2108_v21, %v3444_v53  ;;  %1048 = vmatmul.bf16.gmra.mxu1 %v3275_v44  ;;  %v3468_v42 = vpop.permute.xlu1 %1335 }
 0x1b3   :  { %v1552_v61 = vadd.f32 %v1551_v26, %v1421_v56  ;;  %2115 = vtanh.f32 %v805_v59  ;;  %v1427_v25 = vmul.f32 %v2110_v35, %v3444_v53  ;;  %1097 = vmatmul.bf16.gmra.mxu2 %v3275_v44 }
 0x1b4   :  { %2117 = vtanh.f32 %v854_v29  ;;  %v1490_v47 = vadd.f32 %v1489_v3, %v1426_v13  ;;  %1146 = vmatmul.bf16.gmra.mxu3 %v3275_v44 }
 0x1b5   :  { %v1511_v33 = vadd.f32 %v1510_v2, %v1427_v25 }
 0x1b6   :  { %v902_v0 = vpop.f32.mrf.mxu2  ;;  %v806_v19 = vpop.f32.mrf.mxu0 }
 0x1b7   :  { %v2112_v27 = vpop.eup %2111  ;;  %v903_v60 = vadd.f32 %v902_v0, %v3321_v30  ;;  %v951_v50 = vpop.f32.mrf.mxu3  ;;  %v807_v10 = vadd.f32 %v806_v19, %v3319_v20 }
 0x1b8   :  { %v2114_v17 = vpop.eup %2113  ;;  %v1428_v18 = vmul.f32 %v2112_v27, %v3444_v53  ;;  %v952_v11 = vadd.f32 %v951_v50, %v3321_v30  ;;  %v855_v40 = vpop.f32.mrf.mxu1 }
 0x1b9   :  { %v2116_v26 = vpop.eup %2115  ;;  %v1429_v44 = vmul.f32 %v2114_v17, %v3444_v53  ;;  %2119 = vtanh.f32 %v903_v60  ;;  %v856_v23 = vadd.f32 %v855_v40, %v3319_v20 }
 0x1ba   :  { %v2118_v3 = vpop.eup %2117  ;;  %v1532_v2 = vadd.f32 %v1531_v49, %v1428_v18  ;;  %2121 = vtanh.f32 %v952_v11  ;;  %v1434_v41 = vmul.f32 %v2116_v26, %v3458_v15  ;;  %v3482_v11 = vpop.permute.xlu2 %1339 }
 0x1bb   :  { %v1553_v22 = vadd.f32 %v1552_v61, %v1429_v44  ;;  %2123 = vtanh.f32 %v807_v10  ;;  %v1435_v6 = vmul.f32 %v2118_v3, %v3458_v15  ;;  %3817 = vst [vmem:[#allocation6_spill] sm:$0xff] %v3482_v11 }
 0x1bc   :  { %2125 = vtanh.f32 %v856_v23  ;;  %v1491_v57 = vadd.f32 %v1490_v47, %v1434_v41 }
 0x1bd   :  { %v1512_v4 = vadd.f32 %v1511_v33, %v1435_v6 }
 0x1be   :  { %v904_v46 = vpop.f32.mrf.mxu2  ;;  %v809_v21 = vpop.f32.mrf.mxu0 }
 0x1bf   :  { %v2120_v43 = vpop.eup %2119  ;;  %v905_v59 = vadd.f32 %v904_v46, %v3319_v20  ;;  %v953_v36 = vpop.f32.mrf.mxu3  ;;  %v810_v49 = vadd.f32 %v809_v21, %v3324_v8 }
 0x1c0   :  { %v2122_v56 = vpop.eup %2121  ;;  %v1436_v29 = vmul.f32 %v2120_v43, %v3458_v15  ;;  %v954_v35 = vadd.f32 %v953_v36, %v3319_v20  ;;  %v858_v13 = vpop.f32.mrf.mxu1 }
 0x1c1   :  { %v2124_v61 = vpop.eup %2123  ;;  %v1437_v25 = vmul.f32 %v2122_v56, %v3458_v15  ;;  %2127 = vtanh.f32 %v905_v59  ;;  %v859_v47 = vadd.f32 %v858_v13, %v3324_v8  ;;  %1004 = vmatmul.bf16.gmra.mxu0 %v3290_v14 }
 0x1c2   :  { %v2126_v33 = vpop.eup %2125  ;;  %v1533_v0 = vadd.f32 %v1532_v2, %v1436_v29  ;;  %2129 = vtanh.f32 %v954_v35  ;;  %v1442_v27 = vmul.f32 %v2124_v61, %v3468_v42  ;;  %1053 = vmatmul.bf16.gmra.mxu1 %v3290_v14  ;;  %v3492_v35 = vpop.permute.xlu0 %1343 }
 0x1c3   :  { %v1554_v60 = vadd.f32 %v1553_v22, %v1437_v25  ;;  %2131 = vtanh.f32 %v810_v49  ;;  %v1443_v50 = vmul.f32 %v2126_v33, %v3468_v42  ;;  %1102 = vmatmul.bf16.gmra.mxu2 %v3290_v14  ;;  %3818 = vst [vmem:[#allocation16_spill] sm:$0xff] %v3492_v35 }
 0x1c4   :  { %2133 = vtanh.f32 %v859_v47  ;;  %v1492_v19 = vadd.f32 %v1491_v57, %v1442_v27  ;;  %1151 = vmatmul.bf16.gmra.mxu3 %v3290_v14 }
 0x1c5   :  { %v1513_v17 = vadd.f32 %v1512_v4, %v1443_v50 }
 0x1c6   :  { %v907_v18 = vpop.f32.mrf.mxu2  ;;  %v811_v44 = vpop.f32.mrf.mxu0 }
 0x1c7   :  { %v2128_v10 = vpop.eup %2127  ;;  %v908_v40 = vadd.f32 %v907_v18, %v3324_v8  ;;  %v956_v26 = vpop.f32.mrf.mxu3  ;;  %v812_v41 = vadd.f32 %v811_v44, %v3334_v48 }
 0x1c8   :  { %v2130_v23 = vpop.eup %2129  ;;  %v1444_v3 = vmul.f32 %v2128_v10, %v3468_v42  ;;  %v957_v2 = vadd.f32 %v956_v26, %v3324_v8  ;;  %v860_v22 = vpop.f32.mrf.mxu1 }
 0x1c9   :  { %v2132_v6 = vpop.eup %2131  ;;  %v1445_v14 = vmul.f32 %v2130_v23, %v3468_v42  ;;  %2135 = vtanh.f32 %v908_v40  ;;  %v861_v57 = vadd.f32 %v860_v22, %v3334_v48 }
 0x1ca   :  { %v2134_v4 = vpop.eup %2133  ;;  %v1534_v46 = vadd.f32 %v1533_v0, %v1444_v3  ;;  %2137 = vtanh.f32 %v957_v2  ;;  %v1450_v43 = vmul.f32 %v2132_v6, %v3482_v11 }
 0x1cb   :  { %v1555_v59 = vadd.f32 %v1554_v60, %v1445_v14  ;;  %2139 = vtanh.f32 %v812_v41  ;;  %v1451_v36 = vmul.f32 %v2134_v4, %v3482_v11  ;;  %v3506_v41 = vpop.permute.xlu1 %1347 }
 0x1cc   :  { %2141 = vtanh.f32 %v861_v57  ;;  %v1493_v21 = vadd.f32 %v1492_v19, %v1450_v43  ;;  %3819 = vst [vmem:[#allocation7_spill] sm:$0xff] %v3506_v41 }
 0x1cd   :  { %v1514_v56 = vadd.f32 %v1513_v17, %v1451_v36 }
 0x1ce   :  { %v909_v29 = vpop.f32.mrf.mxu2  ;;  %v814_v25 = vpop.f32.mrf.mxu0 }
 0x1cf   :  { %v2136_v49 = vpop.eup %2135  ;;  %v910_v13 = vadd.f32 %v909_v29, %v3334_v48  ;;  %v958_v61 = vpop.f32.mrf.mxu3  ;;  %v815_v27 = vadd.f32 %v814_v25, %v3328_v7 }
 0x1d0   :  { %v2138_v47 = vpop.eup %2137  ;;  %v1452_v33 = vmul.f32 %v2136_v49, %v3482_v11  ;;  %v959_v0 = vadd.f32 %v958_v61, %v3334_v48  ;;  %v863_v60 = vpop.f32.mrf.mxu1 }
 0x1d1   :  { %v2140_v50 = vpop.eup %2139  ;;  %v1453_v19 = vmul.f32 %v2138_v47, %v3482_v11  ;;  %2143 = vtanh.f32 %v910_v13  ;;  %v864_v17 = vadd.f32 %v863_v60, %v3328_v7  ;;  %1009 = vmatmul.bf16.gmra.mxu0 %v3305_v37 }
 0x1d2   :  { %v2142_v18 = vpop.eup %2141  ;;  %2145 = vtanh.f32 %v959_v0  ;;  %v1458_v10 = vmul.f32 %v2140_v50, %v3492_v35  ;;  %v1535_v40 = vadd.f32 %v1534_v46, %v1452_v33  ;;  %1058 = vmatmul.bf16.gmra.mxu1 %v3305_v37 }
 0x1d3   :  { %2147 = vtanh.f32 %v815_v27  ;;  %v1459_v26 = vmul.f32 %v2142_v18, %v3492_v35  ;;  %1107 = vmatmul.bf16.gmra.mxu2 %v3305_v37  ;;  %v1556_v44 = vadd.f32 %v1555_v59, %v1453_v19  ;;  %v3516_v27 = vpop.permute.xlu2 %1351 }
 0x1d4   :  { %2149 = vtanh.f32 %v864_v17  ;;  %1156 = vmatmul.bf16.gmra.mxu3 %v3305_v37  ;;  %v1494_v23 = vadd.f32 %v1493_v21, %v1458_v10  ;;  %3820 = vst [vmem:[#allocation9_spill] sm:$0xff] %v3516_v27 }
 0x1d5   :  { %v1515_v3 = vadd.f32 %v1514_v56, %v1459_v26 }
 0x1d6   :  { %v912_v2 = vpop.f32.mrf.mxu2  ;;  %v816_v57 = vpop.f32.mrf.mxu0 }
 0x1d7   :  { %v2144_v22 = vpop.eup %2143  ;;  %v913_v6 = vadd.f32 %v912_v2, %v3328_v7  ;;  %v961_v14 = vpop.f32.mrf.mxu3  ;;  %v817_v59 = vadd.f32 %v816_v57, %v3342_v16 }
 0x1d8   :  { %v2146_v4 = vpop.eup %2145  ;;  %v1460_v46 = vmul.f32 %v2144_v22, %v3492_v35  ;;  %v962_v43 = vadd.f32 %v961_v14, %v3328_v7  ;;  %v865_v36 = vpop.f32.mrf.mxu1 }
 0x1d9   :  { %v2148_v29 = vpop.eup %2147  ;;  %v1461_v37 = vmul.f32 %v2146_v4, %v3492_v35  ;;  %2151 = vtanh.f32 %v913_v6  ;;  %v866_v21 = vadd.f32 %v865_v36, %v3342_v16 }
 0x1da   :  { %v2150_v56 = vpop.eup %2149  ;;  %2153 = vtanh.f32 %v962_v43  ;;  %v1466_v49 = vmul.f32 %v2148_v29, %v3506_v41  ;;  %v1536_v13 = vadd.f32 %v1535_v40, %v1460_v46 }
 0x1db   :  { %2155 = vtanh.f32 %v817_v59  ;;  %v1467_v61 = vmul.f32 %v2150_v56, %v3506_v41  ;;  %v1557_v25 = vadd.f32 %v1556_v44, %v1461_v37 }
 0x1dc   :  { %2157 = vtanh.f32 %v866_v21  ;;  %v1495_v47 = vadd.f32 %v1494_v23, %v1466_v49 }
 0x1dd   :  { %v1516_v33 = vadd.f32 %v1515_v3, %v1467_v61 }
 0x1de   :  { %v914_v0 = vpop.f32.mrf.mxu2  ;;  %v975_v17 = vpop.f32.mrf.mxu0 }
 0x1df   :  { %v2152_v60 = vpop.eup %2151  ;;  %v915_v50 = vadd.f32 %v914_v0, %v3342_v16  ;;  %v963_v19 = vpop.f32.mrf.mxu3  ;;  %v976_v4 = vadd.f32 %v975_v17, %v3277_v34 }
 0x1e0   :  { %v2154_v18 = vpop.eup %2153  ;;  %v1468_v10 = vmul.f32 %v2152_v60, %v3506_v41  ;;  %v964_v40 = vadd.f32 %v963_v19, %v3342_v16  ;;  %v1024_v26 = vpop.f32.mrf.mxu1 }
 0x1e1   :  { %v2156_v2 = vpop.eup %2155  ;;  %v1469_v44 = vmul.f32 %v2154_v18, %v3506_v41  ;;  %2159 = vtanh.f32 %v915_v50  ;;  %v1025_v43 = vadd.f32 %v1024_v26, %v3277_v34 }
 0x1e2   :  { %v2158_v23 = vpop.eup %2157  ;;  %v1537_v3 = vadd.f32 %v1536_v13, %v1468_v10  ;;  %2161 = vtanh.f32 %v964_v40  ;;  %v1474_v22 = vmul.f32 %v2156_v2, %v3516_v27 }
 0x1e3   :  { %v1558_v6 = vadd.f32 %v1557_v25, %v1469_v44  ;;  %v1475_v14 = vmul.f32 %v2158_v23, %v3516_v27  ;;  %2163 = vtanh.f32 %v976_v4 }
 0x1e4   :  { %v3524_v57 = vadd.f32 %v1495_v47, %v1474_v22  ;;  %2165 = vtanh.f32 %v1025_v43 }
 0x1e5   :  { %v3527_v46 = vadd.f32 %v1516_v33, %v1475_v14 }
 0x1e6   :  { %v1073_v59 = vpop.f32.mrf.mxu2  ;;  %v977_v37 = vpop.f32.mrf.mxu0 }
 0x1e7   :  { %v2160_v36 = vpop.eup %2159  ;;  %v1122_v29 = vpop.f32.mrf.mxu3  ;;  %v978_v49 = vadd.f32 %v977_v37, %v3296_v54  ;;  %v1074_v0 = vadd.f32 %v1073_v59, %v3277_v34 }
 0x1e8   :  { %v2162_v21 = vpop.eup %2161  ;;  %v1476_v56 = vmul.f32 %v2160_v36, %v3516_v27  ;;  %v1026_v13 = vpop.f32.mrf.mxu1  ;;  %v1123_v60 = vadd.f32 %v1122_v29, %v3277_v34 }
 0x1e9   :  { %v1477_v61 = vmul.f32 %v2162_v21, %v3516_v27  ;;  %v1027_v25 = vadd.f32 %v1026_v13, %v3296_v54  ;;  %2167 = vtanh.f32 %v978_v49  ;;  %v2164_v19 = vpop.eup %2163 }
 0x1ea   :  { %v3534_v47 = vadd.f32 %v1537_v3, %v1476_v56  ;;  %v2166_v40 = vpop.eup %2165  ;;  %v1358_v22 = vmul.f32 %v2164_v19, %v3346_v51 }
 0x1eb   :  { %v3536_v33 = vadd.f32 %v1558_v6, %v1477_v61  ;;  %2169 = vtanh.f32 %v1027_v25  ;;  %v1359_v14 = vmul.f32 %v2166_v40, %v3346_v51 }
 0x1ec   :  { %2171 = vtanh.f32 %v1074_v0 }
 0x1ed   :  { %2173 = vtanh.f32 %v1123_v60 }
 0x1ee   :  { %v1075_v50 = vpop.f32.mrf.mxu2  ;;  %v980_v10 = vpop.f32.mrf.mxu0 }
 0x1ef   :  { %v1076_v17 = vadd.f32 %v1075_v50, %v3296_v54  ;;  %v1124_v18 = vpop.f32.mrf.mxu3  ;;  %v981_v2 = vadd.f32 %v980_v10, %v3285_v63  ;;  %v2168_v23 = vpop.eup %2167 }
 0x1f0   :  { %v1125_v26 = vadd.f32 %v1124_v18, %v3296_v54  ;;  %v1029_v44 = vpop.f32.mrf.mxu1  ;;  %v1366_v6 = vmul.f32 %v2168_v23, %v3344_v62 }
 0x1f1   :  { %2175 = vtanh.f32 %v1076_v17  ;;  %v1030_v3 = vadd.f32 %v1029_v44, %v3285_v63  ;;  %v2170_v34 = vpop.eup %2169 }
 0x1f2   :  { %2177 = vtanh.f32 %v1125_v26  ;;  %v1367_v4 = vmul.f32 %v2170_v34, %v3344_v62  ;;  %v1566_v43 = vadd.f32 %v1366_v6, %v1358_v22  ;;  %v2172_v54 = vpop.eup %2171 }
 0x1f3   :  { %2179 = vtanh.f32 %v981_v2  ;;  %v2174_v36 = vpop.eup %2173  ;;  %v1360_v61 = vmul.f32 %v2172_v54, %v3346_v51 }
 0x1f4   :  { %2181 = vtanh.f32 %v1030_v3  ;;  %v1587_v59 = vadd.f32 %v1367_v4, %v1359_v14  ;;  %v1361_v17 = vmul.f32 %v2174_v36, %v3346_v51 }
 0x1f6   :  { %v1078_v29 = vpop.f32.mrf.mxu2  ;;  %v982_v49 = vpop.f32.mrf.mxu0 }
 0x1f7   :  { %v2176_v37 = vpop.eup %2175  ;;  %v1079_v21 = vadd.f32 %v1078_v29, %v3285_v63  ;;  %v1127_v56 = vpop.f32.mrf.mxu3  ;;  %v983_v60 = vadd.f32 %v982_v49, %v3283_v38 }
 0x1f8   :  { %v2178_v13 = vpop.eup %2177  ;;  %v1368_v25 = vmul.f32 %v2176_v37, %v3344_v62  ;;  %v1128_v0 = vadd.f32 %v1127_v56, %v3285_v63  ;;  %v1031_v50 = vpop.f32.mrf.mxu1 }
 0x1f9   :  { %v2180_v19 = vpop.eup %2179  ;;  %v1369_v18 = vmul.f32 %v2178_v13, %v3344_v62  ;;  %2183 = vtanh.f32 %v1079_v21  ;;  %v1032_v10 = vadd.f32 %v1031_v50, %v3283_v38 }
 0x1fa   :  { %v2182_v40 = vpop.eup %2181  ;;  %v1608_v26 = vadd.f32 %v1368_v25, %v1360_v61  ;;  %v1374_v2 = vmul.f32 %v2180_v19, %v3360_v31  ;;  %2185 = vtanh.f32 %v1128_v0 }
 0x1fb   :  { %v1629_v44 = vadd.f32 %v1369_v18, %v1361_v17  ;;  %v1375_v23 = vmul.f32 %v2182_v40, %v3360_v31  ;;  %2187 = vtanh.f32 %v983_v60 }
 0x1fc   :  { %v1567_v63 = vadd.f32 %v1566_v43, %v1374_v2  ;;  %2189 = vtanh.f32 %v1032_v10 }
 0x1fd   :  { %v1588_v3 = vadd.f32 %v1587_v59, %v1375_v23 }
 0x1fe   :  { %v1080_v34 = vpop.f32.mrf.mxu2  ;;  %v985_v6 = vpop.f32.mrf.mxu0 }
 0x1ff   :  { %v2184_v22 = vpop.eup %2183  ;;  %v1081_v51 = vadd.f32 %v1080_v34, %v3283_v38  ;;  %v1129_v62 = vpop.f32.mrf.mxu3  ;;  %v986_v36 = vadd.f32 %v985_v6, %v3300_v12 }
 0x200   :  { %v2186_v14 = vpop.eup %2185  ;;  %v1376_v4 = vmul.f32 %v2184_v22, %v3360_v31  ;;  %v1130_v54 = vadd.f32 %v1129_v62, %v3283_v38  ;;  %v1034_v29 = vpop.f32.mrf.mxu1 }
 0x201   :  { %v2188_v37 = vpop.eup %2187  ;;  %v1377_v21 = vmul.f32 %v2186_v14, %v3360_v31  ;;  %2191 = vtanh.f32 %v1081_v51  ;;  %v1035_v43 = vadd.f32 %v1034_v29, %v3300_v12 }
 0x202   :  { %v2190_v59 = vpop.eup %2189  ;;  %v1609_v56 = vadd.f32 %v1608_v26, %v1376_v4  ;;  %v1382_v49 = vmul.f32 %v2188_v37, %v3372_v45  ;;  %2193 = vtanh.f32 %v1130_v54 }
 0x203   :  { %v1630_v13 = vadd.f32 %v1629_v44, %v1377_v21  ;;  %v1383_v61 = vmul.f32 %v2190_v59, %v3372_v45  ;;  %2195 = vtanh.f32 %v986_v36 }
 0x204   :  { %v1568_v25 = vadd.f32 %v1567_v63, %v1382_v49  ;;  %2197 = vtanh.f32 %v1035_v43 }
 0x205   :  { %v1589_v38 = vadd.f32 %v1588_v3, %v1383_v61 }
 0x206   :  { %v1083_v0 = vpop.f32.mrf.mxu2  ;;  %v987_v19 = vpop.f32.mrf.mxu0 }
 0x207   :  { %v2192_v60 = vpop.eup %2191  ;;  %v1084_v50 = vadd.f32 %v1083_v0, %v3300_v12  ;;  %v1132_v31 = vpop.f32.mrf.mxu3 }
 0x208   :  { %v2194_v17 = vpop.eup %2193  ;;  %v1384_v18 = vmul.f32 %v2192_v60, %v3372_v45  ;;  %v1133_v10 = vadd.f32 %v1132_v31, %v3300_v12  ;;  %v1036_v40 = vpop.f32.mrf.mxu1 }
 0x209   :  { %v2196_v26 = vpop.eup %2195  ;;  %v1385_v2 = vmul.f32 %v2194_v17, %v3372_v45  ;;  %2199 = vtanh.f32 %v1084_v50 }
 0x20a   :  { %v2198_v44 = vpop.eup %2197  ;;  %v1610_v23 = vadd.f32 %v1609_v56, %v1384_v18  ;;  %v1390_v63 = vmul.f32 %v2196_v26, %v3386_v39  ;;  %2201 = vtanh.f32 %v1133_v10  ;;  %v1539_v10 = vrot.slane %v3534_v47, 4 }
 0x20b   :  { %v1631_v3 = vadd.f32 %v1630_v13, %v1385_v2  ;;  %v1391_v34 = vmul.f32 %v2198_v44, %v3386_v39  ;;  %v1560_v26 = vrot.slane %v3536_v33, 4 }
 0x20c   :  { %v3572_v22 = vadd.f32 %v1568_v25, %v1390_v63 }
 0x20d   :  { %v3574_v51 = vadd.f32 %v1589_v38, %v1391_v34  ;;  %v1497_v38 = vrot.slane %v3524_v57, 4  ;;  %v1561_v34 = vadd.f32 %v1560_v26, %v3536_v33  ;;  %v3617_v26 = vpop.permute.xlu0 %1652 }
 0x20e   :  { %v1085_v62 = vpop.f32.mrf.mxu2  ;;  %v990_v14 = vpop.f32.mrf.mxu0 }
 0x20f   :  { %v2200_v6 = vpop.eup %2199  ;;  %v1134_v12 = vpop.f32.mrf.mxu3  ;;  %v1498_v31 = vadd.f32 %v1497_v38, %v3524_v57 }
 0x210   :  { %v2202_v4 = vpop.eup %2201  ;;  %v1392_v45 = vmul.f32 %v2200_v6, %v3386_v39  ;;  %v1039_v54 = vpop.f32.mrf.mxu1  ;;  %v988_v6 = vadd.f32 %v987_v19, %v3298_v9  ;;  %v1135_v19 = vadd.f32 %v1134_v12, %v3298_v9 }
 0x211   :  { %v1393_v36 = vmul.f32 %v2202_v4, %v3386_v39  ;;  %v1518_v39 = vrot.slane %v3527_v46, 4  ;;  %v1499_v2 = vrot.slane %v1498_v31, 2  ;;  %v1040_v27 = vadd.f32 %v1039_v54, %v3307_v1 }
 0x212   :  { %v3578_v29 = vadd.f32 %v1610_v23, %v1392_v45  ;;  %2203 = vtanh.f32 %v988_v6 }
 0x213   :  { %v3580_v37 = vadd.f32 %v1631_v3, %v1393_v36  ;;  %v1519_v17 = vadd.f32 %v1518_v39, %v3527_v46  ;;  %v1500_v63 = vadd.f32 %v1499_v2, %v1498_v31  ;;  %v1540_v3 = vadd.f32 %v1539_v10, %v3534_v47 }
 0x214   :  { %v1037_v46 = vadd.f32 %v1036_v40, %v3298_v9  ;;  %v1562_v39 = vrot.slane %v1561_v34, 2  ;;  %v991_v40 = vadd.f32 %v990_v14, %v3307_v1 }
 0x215   :  { %v1520_v44 = vrot.slane %v1519_v17, 2  ;;  %v1541_v38 = vrot.slane %v1540_v3, 2  ;;  %v1501_v47 = vrot.slane %v1500_v63, 1 }
 0x216   :  { %v1088_v21 = vpop.f32.mrf.mxu2  ;;  %v992_v59 = vpop.f32.mrf.mxu0  ;;  %v1563_v2 = vadd.f32 %v1562_v39, %v1561_v34  ;;  %2205 = vtanh.f32 %v1037_v46 }
 0x217   :  { %v1137_v43 = vpop.f32.mrf.mxu3  ;;  %v1521_v23 = vadd.f32 %v1520_v44, %v1519_v17  ;;  %v1086_v17 = vadd.f32 %v1085_v62, %v3298_v9  ;;  %v1542_v33 = vadd.f32 %v1541_v38, %v1540_v3  ;;  %v1089_v62 = vadd.f32 %v1088_v21, %v3307_v1 }
 0x218   :  { %v1041_v56 = vpop.f32.mrf.mxu1  ;;  %v1564_v41 = vrot.slane %v1563_v2, 1  ;;  %v1502_v35 = vadd.f32 %v1501_v47, %v1500_v63  ;;  %v1138_v3 = vadd.f32 %v1137_v43, %v3307_v1  ;;  %v993_v12 = vadd.f32 %v992_v59, %v3311_v5  ;;  %v2204_v63 = vpop.eup %2203 }
 0x219   :  { %v1522_v57 = vrot.slane %v1521_v23, 1  ;;  %v1543_v44 = vrot.slane %v1542_v33, 1  ;;  %2207 = vtanh.f32 %v1086_v17 }
 0x21a   :  { %2209 = vtanh.f32 %v1135_v19  ;;  %v1565_v9 = vadd.f32 %v1564_v41, %v1563_v2  ;;  %v1655_v59 = vadd.f32 %v3617_v26, %v1502_v35 }
 0x21b   :  { %v1523_v10 = vadd.f32 %v1522_v57, %v1521_v23  ;;  %v1544_v11 = vadd.f32 %v1543_v44, %v1542_v33  ;;  %2211 = vtanh.f32 %v991_v40  ;;  %v1042_v57 = vadd.f32 %v1041_v56, %v3311_v5 }
 0x21c   :  { %2213 = vtanh.f32 %v1040_v27  ;;  %v1658_v1 = vadd.f32 %v3617_v26, %v1565_v9  ;;  %v2206_v41 = vpop.eup %2205  ;;  %v1398_v9 = vmul.f32 %v2204_v63, %v3396_v55 }
 0x21d   :  { %v1656_v23 = vadd.f32 %v3617_v26, %v1523_v10  ;;  %v1657_v54 = vadd.f32 %v3617_v26, %v1544_v11  ;;  %2215 = vtanh.f32 %v1089_v62 }
 0x21e   :  { %v3582_v49 = vpop.f32.mrf.mxu2  ;;  %v3586_v61 = vpop.f32.mrf.mxu0  ;;  %2217 = vtanh.f32 %v1138_v3  ;;  %v1673_v27 = vrot.slane %v1658_v1, 5 }
 0x21f   :  { %v3584_v13 = vpop.f32.mrf.mxu3  ;;  %v1671_v21 = vrot.slane %v1656_v23, 7  ;;  %v1091_v43 = vadd.f32 %v3582_v49, %v3311_v5  ;;  %v1672_v38 = vrot.slane %v1657_v54, 6  ;;  %v2208_v39 = vpop.eup %2207  ;;  %2219 = vtanh.f32 %v993_v12 }
 0x220   :  { %v3588_v25 = vpop.f32.mrf.mxu1  ;;  %v1140_v11 = vadd.f32 %v3584_v13, %v3311_v5  ;;  %v996_v56 = vadd.f32 %v3586_v61, %v3309_v52  ;;  %v2210_v47 = vpop.eup %2209  ;;  %2221 = vtanh.f32 %v1042_v57  ;;  %v1399_v12 = vmul.f32 %v2206_v41, %v3396_v55 }
 0x221   :  { %v1679_v17 = vsel %vm1678_vm0, %v1655_v59, %v1671_v21  ;;  %v1045_v10 = vadd.f32 %v3588_v25, %v3309_v52  ;;  %v2212_v35 = vpop.eup %2211  ;;  %2223 = vtanh.f32 %v1091_v43  ;;  %v1681_v33 = vsel %vm1680_vm1, %v1672_v38, %v1673_v27 }
 0x222   :  { %v2214_v5 = vpop.eup %2213  ;;  %2225 = vtanh.f32 %v1140_v11  ;;  %v3650_v19 = vsel %vm1682_vm2, %v1679_v17, %v1681_v33  ;;  %v1570_v41 = vadd.f32 %v3572_v22, %v1398_v9  ;;  %v1400_v59 = vmul.f32 %v2208_v39, %v3396_v55 }
 0x223   :  { %v2216_v2 = vpop.eup %2215  ;;  %2227 = vtanh.f32 %v996_v56  ;;  %v1406_v22 = vmul.f32 %v2212_v35, %v3410_v32 }
 0x224   :  { %v2218_v62 = vpop.eup %2217  ;;  %2229 = vtanh.f32 %v1045_v10  ;;  %v1408_v39 = vmul.f32 %v2216_v2, %v3410_v32 }
 0x225   :  { %v2220_v3 = vpop.eup %2219 }
 0x226   :  { %v3592_v0 = vpop.f32.mrf.mxu2  ;;  %v3596_v50 = vpop.f32.mrf.mxu0 }
 0x227   :  { %v3594_v60 = vpop.f32.mrf.mxu3  ;;  %v1094_v49 = vadd.f32 %v3592_v0, %v3309_v52  ;;  %v998_v25 = vadd.f32 %v3596_v50, %v3317_v24 }
 0x228   :  { %v3600_v18 = vpop.f32.mrf.mxu1  ;;  %v1143_v13 = vadd.f32 %v3594_v60, %v3309_v52  ;;  %v2222_v60 = vpop.eup %2221 }
 0x229   :  { %v1047_v0 = vadd.f32 %v3600_v18, %v3317_v24  ;;  %2231 = vtanh.f32 %v1094_v49  ;;  %v2224_v54 = vpop.eup %2223  ;;  %v1415_v10 = vmul.f32 %v2222_v60, %v3420_v58 }
 0x22a   :  { %2233 = vtanh.f32 %v1143_v13  ;;  %v2226_v21 = vpop.eup %2225  ;;  %v1571_v13 = vadd.f32 %v1570_v41, %v1406_v22  ;;  %v1416_v60 = vmul.f32 %v2224_v54, %v3420_v58 }
 0x22b   :  { %2235 = vtanh.f32 %v998_v25  ;;  %v1417_v9 = vmul.f32 %v2226_v21, %v3420_v58 }
 0x22c   :  { %2237 = vtanh.f32 %v1047_v0 }
 0x22e   :  { %v3607_v4 = vpop.f32.mrf.mxu2  ;;  %v3612_v36 = vpop.f32.mrf.mxu0 }
 0x22f   :  { %v3610_v45 = vpop.f32.mrf.mxu3  ;;  %v1096_v52 = vadd.f32 %v3607_v4, %v3317_v24  ;;  %v1001_v18 = vadd.f32 %v3612_v36, %v3321_v30  ;;  %v2228_v4 = vpop.eup %2227 }
 0x230   :  { %v3615_v31 = vpop.f32.mrf.mxu1  ;;  %v1145_v50 = vadd.f32 %v3610_v45, %v3317_v24  ;;  %v2230_v1 = vpop.eup %2229  ;;  %v1591_v24 = vadd.f32 %v3574_v51, %v1399_v12  ;;  %v1407_v51 = vmul.f32 %v2214_v5, %v3410_v32 }
 0x231   :  { %v1050_v57 = vadd.f32 %v3615_v31, %v3321_v30  ;;  %2239 = vtanh.f32 %v1096_v52  ;;  %v2232_v43 = vpop.eup %2231  ;;  %v1401_v31 = vmul.f32 %v2210_v47, %v3396_v55  ;;  %v1409_v55 = vmul.f32 %v2218_v62, %v3410_v32 }
 0x232   :  { %2241 = vtanh.f32 %v1145_v50  ;;  %v2234_v27 = vpop.eup %2233  ;;  %v1414_v47 = vmul.f32 %v2220_v3, %v3420_v58  ;;  %v1424_v54 = vmul.f32 %v2232_v43, %v3434_v28 }
 0x233   :  { %2243 = vtanh.f32 %v1001_v18  ;;  %v2236_v56 = vpop.eup %2235  ;;  %v1633_v33 = vadd.f32 %v3580_v37, %v1401_v31  ;;  %v1425_v58 = vmul.f32 %v2234_v27, %v3434_v28 }
 0x234   :  { %2245 = vtanh.f32 %v1050_v57  ;;  %v2238_v17 = vpop.eup %2237  ;;  %v1422_v57 = vmul.f32 %v2228_v4, %v3434_v28 }
 0x235   :  { %v1634_v0 = vadd.f32 %v1633_v33, %v1409_v55 }
 0x236   :  { %v3625_v6 = vpop.f32.mrf.mxu2  ;;  %v3630_v34 = vpop.f32.mrf.mxu0 }
 0x237   :  { %v3628_v14 = vpop.f32.mrf.mxu3  ;;  %v1099_v63 = vadd.f32 %v3625_v6, %v3321_v30  ;;  %v1003_v38 = vadd.f32 %v3630_v34, %v3319_v20  ;;  %v3686_v49 = vpop.eup %2239 }
 0x238   :  { %v3634_v46 = vpop.f32.mrf.mxu1  ;;  %v1148_v45 = vadd.f32 %v3628_v14, %v3321_v30  ;;  %v3691_v5 = vpop.eup %2241 }
 0x239   :  { %v1052_v30 = vadd.f32 %v3634_v46, %v3319_v20  ;;  %2247 = vtanh.f32 %v1099_v63  ;;  %v1612_v46 = vadd.f32 %v3578_v29, %v1400_v59  ;;  %v2244_v25 = vpop.eup %2243  ;;  %v1572_v29 = vadd.f32 %v1571_v13, %v1414_v47 }
 0x23a   :  { %2249 = vtanh.f32 %v1148_v45  ;;  %v1423_v63 = vmul.f32 %v2230_v1, %v3434_v28  ;;  %v1431_v59 = vmul.f32 %v2238_v17, %v3444_v53  ;;  %v1438_v55 = vmul.f32 %v2244_v25, %v3458_v15 }
 0x23b   :  { %2251 = vtanh.f32 %v1003_v38  ;;  %v1613_v62 = vadd.f32 %v1612_v46, %v1408_v39  ;;  %v1635_v38 = vadd.f32 %v1634_v0, %v1417_v9  ;;  %v1432_v47 = vmul.f32 %v3686_v49, %v3444_v53 }
 0x23c   :  { %2253 = vtanh.f32 %v1052_v30  ;;  %v1433_v49 = vmul.f32 %v3691_v5, %v3444_v53 }
 0x23d   :  { %v1614_v31 = vadd.f32 %v1613_v62, %v1416_v60  ;;  %v1636_v30 = vadd.f32 %v1635_v38, %v1425_v58 }
 0x23e   :  { %v1100_v61 = vpop.f32.mrf.mxu2  ;;  %v1005_v44 = vpop.f32.mrf.mxu0 }
 0x23f   :  { %v1149_v40 = vpop.f32.mrf.mxu3  ;;  %v1101_v34 = vadd.f32 %v1100_v61, %v3319_v20  ;;  %v1006_v32 = vadd.f32 %v1005_v44, %v3324_v8  ;;  %v1592_v61 = vadd.f32 %v1591_v24, %v1407_v51  ;;  %v1615_v51 = vadd.f32 %v1614_v31, %v1424_v54 }
 0x240   :  { %v1054_v23 = vpop.f32.mrf.mxu1  ;;  %v1150_v35 = vadd.f32 %v1149_v40, %v3319_v20  ;;  %v2246_v40 = vpop.eup %2245 }
 0x241   :  { %v1055_v2 = vadd.f32 %v1054_v23, %v3324_v8  ;;  %2255 = vtanh.f32 %v1101_v34  ;;  %v1593_v3 = vadd.f32 %v1592_v61, %v1415_v10  ;;  %v3696_v52 = vpop.eup %2247  ;;  %v1439_v10 = vmul.f32 %v2246_v40, %v3458_v15 }
 0x242   :  { %2257 = vtanh.f32 %v1150_v35  ;;  %v3701_v18 = vpop.eup %2249 }
 0x243   :  { %2259 = vtanh.f32 %v1006_v32  ;;  %v2252_v24 = vpop.eup %2251  ;;  %v1594_v28 = vadd.f32 %v1593_v3, %v1423_v63  ;;  %v3821_v3 = vld [vmem:[#allocation6_spill] sm:$0xff]  ;;  %v1441_v5 = vmul.f32 %v3701_v18, %v3458_v15 }
 0x244   :  { %2261 = vtanh.f32 %v1055_v2  ;;  %v2254_v45 = vpop.eup %2253  ;;  %v1446_v32 = vmul.f32 %v2252_v24, %v3468_v42  ;;  %v1637_v24 = vadd.f32 %v1636_v30, %v1433_v49 }
 0x245   :  { %v1595_v39 = vadd.f32 %v1594_v28, %v1431_v59  ;;  %v1447_v62 = vmul.f32 %v2254_v45, %v3468_v42 }
 0x246   :  { %v1103_v36 = vpop.f32.mrf.mxu2  ;;  %v1007_v11 = vpop.f32.mrf.mxu0 }
 0x247   :  { %v1152_v6 = vpop.f32.mrf.mxu3  ;;  %v1104_v20 = vadd.f32 %v1103_v36, %v3324_v8  ;;  %v1008_v23 = vadd.f32 %v1007_v11, %v3334_v48  ;;  %v1430_v36 = vmul.f32 %v2236_v56, %v3444_v53  ;;  %v2256_v1 = vpop.eup %2255  ;;  %v1573_v11 = vadd.f32 %v1572_v29, %v1422_v57 }
 0x248   :  { %v1056_v14 = vpop.f32.mrf.mxu1  ;;  %v1153_v37 = vadd.f32 %v1152_v6, %v3324_v8  ;;  %v2258_v43 = vpop.eup %2257  ;;  %v1440_v29 = vmul.f32 %v3696_v52, %v3458_v15  ;;  %v1596_v60 = vadd.f32 %v1595_v39, %v1439_v10  ;;  %v1448_v52 = vmul.f32 %v2256_v1, %v3468_v42  ;;  %v3824_v39 = vld [vmem:[#allocation9_spill] sm:$0xff] }
 0x249   :  { %v1057_v8 = vadd.f32 %v1056_v14, %v3334_v48  ;;  %2263 = vtanh.f32 %v1104_v20  ;;  %v2260_v22 = vpop.eup %2259  ;;  %v1574_v56 = vadd.f32 %v1573_v11, %v1430_v36  ;;  %v1449_v15 = vmul.f32 %v2258_v43, %v3468_v42 }
 0x24a   :  { %2265 = vtanh.f32 %v1153_v37  ;;  %v2262_v14 = vpop.eup %2261  ;;  %v1454_v37 = vmul.f32 %v2260_v22, %v3821_v3  ;;  %v1597_v63 = vadd.f32 %v1596_v60, %v1447_v62  ;;  %v1638_v1 = vadd.f32 %v1637_v24, %v1441_v5 }
 0x24b   :  { %2267 = vtanh.f32 %v1008_v23  ;;  %v1575_v40 = vadd.f32 %v1574_v56, %v1438_v55  ;;  %v1455_v9 = vmul.f32 %v2262_v14, %v3821_v3 }
 0x24c   :  { %2269 = vtanh.f32 %v1057_v8 }
 0x24d   :  { %v1576_v23 = vadd.f32 %v1575_v40, %v1446_v32  ;;  %v1598_v18 = vadd.f32 %v1597_v63, %v1455_v9 }
 0x24e   :  { %v1105_v44 = vpop.f32.mrf.mxu2  ;;  %v1010_v50 = vpop.f32.mrf.mxu0 }
 0x24f   :  { %v1154_v12 = vpop.f32.mrf.mxu3  ;;  %v1011_v21 = vadd.f32 %v1010_v50, %v3328_v7  ;;  %v1106_v6 = vadd.f32 %v1105_v44, %v3334_v48  ;;  %v2264_v17 = vpop.eup %2263  ;;  %v1616_v44 = vadd.f32 %v1615_v51, %v1432_v47  ;;  %v1577_v58 = vadd.f32 %v1576_v23, %v1454_v37 }
 0x250   :  { %v1059_v41 = vpop.f32.mrf.mxu1  ;;  %v1155_v27 = vadd.f32 %v1154_v12, %v3334_v48  ;;  %v2266_v33 = vpop.eup %2265  ;;  %v3822_v12 = vld [vmem:[#allocation16_spill] sm:$0xff]  ;;  %v1456_v11 = vmul.f32 %v2264_v17, %v3821_v3 }
 0x251   :  { %v1060_v4 = vadd.f32 %v1059_v41, %v3328_v7  ;;  %2271 = vtanh.f32 %v1011_v21  ;;  %v2268_v25 = vpop.eup %2267  ;;  %v1617_v54 = vadd.f32 %v1616_v44, %v1440_v29  ;;  %v3823_v21 = vld [vmem:[#allocation7_spill] sm:$0xff]  ;;  %v1457_v30 = vmul.f32 %v2266_v33, %v3821_v3 }
 0x252   :  { %v2270_v20 = vpop.eup %2269  ;;  %v1462_v50 = vmul.f32 %v2268_v25, %v3822_v12 }
 0x253   :  { %2273 = vtanh.f32 %v1060_v4  ;;  %v1463_v8 = vmul.f32 %v2270_v20, %v3822_v12  ;;  %v1618_v51 = vadd.f32 %v1617_v54, %v1448_v52 }
 0x254   :  { %2275 = vtanh.f32 %v1106_v6  ;;  %v1578_v28 = vadd.f32 %v1577_v58, %v1462_v50 }
 0x255   :  { %2277 = vtanh.f32 %v1155_v27  ;;  %v1599_v14 = vadd.f32 %v1598_v18, %v1463_v8 }
 0x256   :  { %v1108_v34 = vpop.f32.mrf.mxu2  ;;  %v1012_v46 = vpop.f32.mrf.mxu0 }
 0x257   :  { %v1109_v48 = vadd.f32 %v1108_v34, %v3328_v7  ;;  %v1157_v35 = vpop.f32.mrf.mxu3  ;;  %v1013_v61 = vadd.f32 %v1012_v46, %v3342_v16  ;;  %v1639_v34 = vadd.f32 %v1638_v1, %v1449_v15 }
 0x258   :  { %v1158_v13 = vadd.f32 %v1157_v35, %v3328_v7  ;;  %v1061_v2 = vpop.f32.mrf.mxu1  ;;  %v2272_v7 = vpop.eup %2271 }
 0x259   :  { %2279 = vtanh.f32 %v1109_v48  ;;  %v1062_v0 = vadd.f32 %v1061_v2, %v3342_v16  ;;  %v2274_v53 = vpop.eup %2273  ;;  %v1470_v45 = vmul.f32 %v2272_v7, %v3823_v21  ;;  %v1640_v46 = vadd.f32 %v1639_v34, %v1457_v30 }
 0x25a   :  { %2281 = vtanh.f32 %v1158_v13  ;;  %v2276_v57 = vpop.eup %2275  ;;  %v1471_v4 = vmul.f32 %v2274_v53, %v3823_v21 }
 0x25b   :  { %2283 = vtanh.f32 %v1013_v61  ;;  %v2278_v41 = vpop.eup %2277  ;;  %v1464_v43 = vmul.f32 %v2276_v57, %v3822_v12  ;;  %v1579_v56 = vadd.f32 %v1578_v28, %v1470_v45 }
 0x25c   :  { %2285 = vtanh.f32 %v1062_v0  ;;  %v1465_v47 = vmul.f32 %v2278_v41, %v3822_v12  ;;  %v1600_v17 = vadd.f32 %v1599_v14, %v1471_v4 }
 0x25e   :  { %v1110_v36 = vpop.f32.mrf.mxu2  ;;  %v1641_v25 = vadd.f32 %v1640_v46, %v1465_v47 }
 0x25f   :  { %v2280_v59 = vpop.eup %2279  ;;  %v1111_v31 = vadd.f32 %v1110_v36, %v3342_v16  ;;  %v1159_v38 = vpop.f32.mrf.mxu3 }
 0x260   :  { %v2282_v6 = vpop.eup %2281  ;;  %v1160_v27 = vadd.f32 %v1159_v38, %v3342_v16  ;;  %v1619_v16 = vadd.f32 %v1618_v51, %v1456_v11  ;;  %v1472_v48 = vmul.f32 %v2280_v59, %v3823_v21 }
 0x261   :  { %v2284_v22 = vpop.eup %2283  ;;  %2287 = vtanh.f32 %v1111_v31  ;;  %v1473_v33 = vmul.f32 %v2282_v6, %v3823_v21 }
 0x262   :  { %v2286_v42 = vpop.eup %2285  ;;  %v1478_v55 = vmul.f32 %v2284_v22, %v3824_v39  ;;  %2289 = vtanh.f32 %v1160_v27  ;;  %v1620_v13 = vadd.f32 %v1619_v16, %v1464_v43 }
 0x263   :  { %v1479_v10 = vmul.f32 %v2286_v42, %v3824_v39  ;;  %v1642_v29 = vadd.f32 %v1641_v25, %v1473_v33 }
 0x264   :  { %v1580_v35 = vadd.f32 %v1579_v56, %v1478_v55  ;;  %v1621_v0 = vadd.f32 %v1620_v13, %v1472_v48 }
 0x265   :  { %v1601_v32 = vadd.f32 %v1600_v17, %v1479_v10 }
 0x266   :  { %v1581_v61 = vrot.slane %v1580_v35, 4 }
 0x267   :  { %v2288_v2 = vpop.eup %2287  ;;  %v1602_v49 = vrot.slane %v1601_v32, 4 }
 0x268   :  { %v2290_v62 = vpop.eup %2289  ;;  %v1582_v20 = vadd.f32 %v1581_v61, %v1580_v35  ;;  %v1480_v40 = vmul.f32 %v2288_v2, %v3824_v39 }
 0x269   :  { %v1603_v3 = vadd.f32 %v1602_v49, %v1601_v32  ;;  %v1481_v37 = vmul.f32 %v2290_v62, %v3824_v39 }
 0x26a   :  { %v1583_v7 = vrot.slane %v1582_v20, 2  ;;  %v1622_v44 = vadd.f32 %v1621_v0, %v1480_v40 }
 0x26b   :  { %v1604_v60 = vrot.slane %v1603_v3, 2  ;;  %v1643_v9 = vadd.f32 %v1642_v29, %v1481_v37 }
 0x26c   :  { %v1584_v53 = vadd.f32 %v1583_v7, %v1582_v20  ;;  %v1623_v5 = vrot.slane %v1622_v44, 4 }
 0x26d   :  { %v1605_v23 = vadd.f32 %v1604_v60, %v1603_v3  ;;  %v1644_v12 = vrot.slane %v1643_v9, 4 }
 0x26e   :  { %v1585_v50 = vrot.slane %v1584_v53, 1  ;;  %v1624_v57 = vadd.f32 %v1623_v5, %v1622_v44 }
 0x26f   :  { %v1606_v63 = vrot.slane %v1605_v23, 1  ;;  %v1645_v52 = vadd.f32 %v1644_v12, %v1643_v9 }
 0x270   :  { %v1625_v8 = vrot.slane %v1624_v57, 2  ;;  %v1586_v41 = vadd.f32 %v1585_v50, %v1584_v53 }
 0x271   :  { %v1646_v24 = vrot.slane %v1645_v52, 2  ;;  %v1607_v54 = vadd.f32 %v1606_v63, %v1605_v23 }
 0x272   :  { %v1626_v58 = vadd.f32 %v1625_v8, %v1624_v57  ;;  %v1659_v21 = vadd.f32 %v3617_v26, %v1586_v41 }
 0x273   :  { %v1647_v45 = vadd.f32 %v1646_v24, %v1645_v52  ;;  %v1660_v36 = vadd.f32 %v3617_v26, %v1607_v54 }
 0x274   :  { %v1627_v59 = vrot.slane %v1626_v58, 1  ;;  %v1674_v15 = vrot.slane %v1659_v21, 4 }
 0x275   :  { %v1648_v18 = vrot.slane %v1647_v45, 1  ;;  %v1675_v4 = vrot.slane %v1660_v36, 3 }
 0x276   :  { %v1628_v31 = vadd.f32 %v1627_v59, %v1626_v58 }
 0x277   :  { %v1649_v38 = vadd.f32 %v1648_v18, %v1647_v45  ;;  %v1685_v6 = vsel %vm1684_vm3, %v1674_v15, %v1675_v4 }
 0x278   :  { %v1661_v1 = vadd.f32 %v3617_v26, %v1628_v31 }
 0x279   :  { %v1662_v11 = vadd.f32 %v3617_v26, %v1649_v38 }
 0x27a   :  { %v1676_v28 = vrot.slane %v1661_v1, 2 }
 0x27b   :  { %v1677_v27 = vrot.slane %v1662_v11, 1 }
 0x27d   :  { %v1687_v22 = vsel %vm1686_vm4, %v1676_v28, %v1677_v27 }
 0x27e   :  { %v1689_v51 = vsel %vm1688_vm5, %v1685_v6, %v1687_v22 }
 0x27f   :  { %v1691_v30 = vsel %vm1690_vm6, %v3650_v19, %v1689_v51 }
 0x280   :  { %1693 = vst [vmem:[#allocation2] sm:$0xff] %v1691_v30 }
 0x281   :  { %1704 = dma.vmem_to_hbm [thread:$0]  %s1700_s12, 128, %s1702_s15, [#allocation3]  }
 0x282   :  { %2331 = dma.done.wait [#allocation3], 128  }
 0x283   :  { %2332 = vsyncadd [#allocation3], 4294967168 }
 0x284   :  { %1709 = vsyncpa [#allocation3], 1 }

</bundles_post_ra>
